<compile_context>
chip_gen: v5e
topology: v5e:2x2
jax: 0.10.0
libtpu: 0.0.40
codegen_flags: <defaults>
</compile_context>

<pallas_src>
import functools

import jax
import jax.numpy as jnp
from jax.experimental import pallas as pl
from jax.experimental.pallas import tpu as pltpu

_NEG = -1e9  # additive mask value (matches typical 0 / -1e9 GAT adjacency usage)


def _gat_kernel(adj_ref, f1_ref, f2_ref, haug_ref, *rest,
                alpha, concat, has_residual, adj_is_mask, fout, ones_col, exp_dtype):
    if has_residual:
        res_ref, out_ref = rest
    else:
        (out_ref,) = rest

    # logits for this row tile: (TN,1) + (1,N) -> (TN,N)
    logits = f1_ref[...] + f2_ref[...]
    # LeakyReLU(x) == max(x, alpha*x), valid for 0 < alpha < 1 (asserted in the wrapper)
    e = jnp.maximum(logits, alpha * logits)
    if adj_is_mask:
        e = jnp.where(adj_ref[...] != 0, e, _NEG)        # int8/bool edge mask, one select
    else:
        e = e + adj_ref[...].astype(jnp.float32)         # additive bias (exact semantics)

    m = jnp.max(e, axis=1, keepdims=True)                # row max: the only XLU reduce left
    p = jnp.exp((e - m).astype(exp_dtype))               # bf16 EUP on v6e/v7x, f32 on v5e

    # One MXU pass yields the aggregation AND (via the ones column) the softmax row sums.
    acc = jnp.dot(p.astype(jnp.bfloat16), haug_ref[...],
                  preferred_element_type=jnp.float32)    # (TN, HW)
    l = acc[:, ones_col:ones_col + 1]                    # sum_j exp(e - m)  (>= 1)
    ret = acc[:, :fout] * pl.reciprocal(l, approx=False)

    if has_residual:
        ret = ret + res_ref[...]
    if concat:  # ELU (clamp the exp argument on the selected-away positive branch)
        ret = jnp.where(ret > 0, ret, jnp.exp(jnp.minimum(ret, 0.0)) - 1.0)

    out_ref[...] = ret.astype(out_ref.dtype)


def _device_kind():
    try:
        return jax.devices()[0].device_kind.lower()
    except Exception:
        return ""


def _vmem_capacity_bytes():
    try:
        return int(pltpu.get_tpu_info().vmem_capacity_bytes)
    except Exception:
        return 64 * 1024 * 1024  # conservative default (v7x per-TC physical VMEM)


def _estimate_vmem(n, tn, fout, hw, adj_bytes, n_adj_buf, has_residual):
    est = n_adj_buf * tn * n * adj_bytes      # adj stream buffers (dominant)
    est += tn * n * 8                         # e (f32) + p temporaries
    est += 2 * tn * 128 * 4                   # f1 blocks (lane-padded to 128)
    est += 2 * 8 * n * 4                      # f2 (sublane-padded to 8)
    est += 2 * n * hw * 2                     # h_aug (bf16, resident)
    est += 2 * tn * fout * 4                  # output blocks
    if has_residual:
        est += 2 * tn * fout * 4              # residual blocks
    return est


def _pick_row_tile(n, fout, hw, adj_bytes, n_adj_buf, has_residual, budget):
    # Largest sublane-aligned tile that divides N, yields >= 2 grid steps (so the adj
    # stream is actually pipelined / megacore-splittable) and fits the VMEM budget.
    for cand in (512, 256, 128, 64, 32):
        if n % cand == 0 and n // cand >= 2 and _estimate_vmem(
                n, cand, fout, hw, adj_bytes, n_adj_buf, has_residual) <= budget:
            return cand
    return n  # single full-extent block (small graphs)


def graph_attention_layer(x, adj, params, *, alpha=0.2, concat=True, residual=True,
                          row_tile=None):
    """adj may be float (additive bias, exact module semantics) or a bool/int8 edge mask."""
    assert 0.0 < alpha < 1.0, "leaky-relu-as-max form requires 0 < alpha < 1"
    n, fin = x.shape
    fout = params["w"].shape[1]

    # ---------- hoisted per-node precompute (plain XLA; O(N*Fin*Fout), tiny) ----------
    xf = x.astype(jnp.float32)
    h = xf @ params["w"].astype(jnp.float32)                                    # seq_fts
    f1 = h @ params["a1"].astype(jnp.float32) + params["b1"].reshape(1, 1)      # (N, 1)
    f2 = (h @ params["a2"].astype(jnp.float32) + params["b2"].reshape(1, 1)).T  # (1, N)

    res = None
    if residual:
        # Replicates the PyTorch quirk: compares seq.size(-1) (= N) with ret.size(-1) (= Fout).
        if n != fout:
            res = xf @ params["w_res"].astype(jnp.float32) + params["b_res"].reshape(1, fout)
        else:
            assert fin == fout, "identity residual requires in_features == out_features"
            res = xf
    has_residual = res is not None

    # h augmented with a ones column so p @ h_aug also yields the softmax row sums.
    # (Keep the augmented width a multiple of 128 for lane-dense MXU tiles.)
    ones_col = fout
    hw = ((fout + 1 + 127) // 128) * 128
    haug = jnp.concatenate(
        [h.astype(jnp.bfloat16),
         jnp.ones((n, 1), jnp.bfloat16),
         jnp.zeros((n, hw - fout - 1), jnp.bfloat16)], axis=1)                  # (N, HW)

    # ---------- adj stream ----------
    adj_is_mask = (adj.dtype == jnp.bool_) or jnp.issubdtype(adj.dtype, jnp.integer)
    if adj_is_mask:
        adj_in = adj if adj.dtype == jnp.int8 else adj.astype(jnp.int8)  # 1 byte/elem
    else:
        adj_in = adj                      # stream untouched: no wrapper-side cast pass
    adj_bytes = adj_in.dtype.itemsize

    # ---------- chip-dependent knobs ----------
    kind = _device_kind()
    n_adj_buf = 3 if "v5" in kind else 2                       # extra DMA buffer on v5e
    exp_dtype = jnp.bfloat16 if ("v6" in kind or "v7" in kind) else jnp.float32

    cap = _vmem_capacity_bytes()
    budget = cap // 2
    tn = (_pick_row_tile(n, fout, hw, adj_bytes, n_adj_buf, has_residual, budget)
          if row_tile is None else row_tile)
    assert n % tn == 0, "row tile must divide N"
    grid = (n // tn,)

    est = _estimate_vmem(n, tn, fout, hw, adj_bytes, n_adj_buf, has_residual)
    vmem_limit = min(max(2 * est + (8 << 20), 32 << 20), int(0.9 * cap))

    # ---------- specs ----------
    if n_adj_buf != 2:
        try:
            adj_spec = pl.BlockSpec((tn, n), lambda i: (i, 0),
                                    pipeline_mode=pl.Buffered(n_adj_buf))
        except TypeError:  # older API without pipeline_mode: fall back to default depth
            adj_spec = pl.BlockSpec((tn, n), lambda i: (i, 0))
    else:
        adj_spec = pl.BlockSpec((tn, n), lambda i: (i, 0))

    in_specs = [
        adj_spec,                                   # adj row block (dominant HBM stream)
        pl.BlockSpec((tn, 1), lambda i: (i, 0)),    # f1 row block (streamed)
        pl.BlockSpec((1, n), lambda i: (0, 0)),     # f2 (resident)
        pl.BlockSpec((n, hw), lambda i: (0, 0)),    # h_aug (resident, bf16)
    ]
    inputs = [adj_in, f1, f2, haug]
    if has_residual:
        in_specs.append(pl.BlockSpec((tn, fout), lambda i: (i, 0)))  # residual (streamed)
        inputs.append(res)

    kernel = functools.partial(
        _gat_kernel, alpha=alpha, concat=concat, has_residual=has_residual,
        adj_is_mask=adj_is_mask, fout=fout, ones_col=ones_col, exp_dtype=exp_dtype)

    return pl.pallas_call(
        kernel,
        out_shape=jax.ShapeDtypeStruct((n, fout), jnp.float32),
        grid=grid,
        in_specs=in_specs,
        out_specs=pl.BlockSpec((tn, fout), lambda i: (i, 0)),
        compiler_params=pltpu.CompilerParams(
            # No cross-step state -> row tiles are independent -> shard across both
            # TensorCores on v7x (no effect on single-TC v5e/v6e).
            dimension_semantics=("parallel",),
            vmem_limit_bytes=vmem_limit,
        ),
    )(*inputs)


def _reference(x, adj_bias, params, alpha, concat, residual):
    h = x @ params["w"]
    f1 = h @ params["a1"] + params["b1"][0]
    f2 = h @ params["a2"] + params["b2"][0]
    logits = f1 + f2.T
    e = jnp.where(logits > 0, logits, alpha * logits) + adj_bias
    coefs = jax.nn.softmax(e, axis=1)
    ret = coefs @ h
    n, fout = ret.shape
    if residual:
        if n != fout:
            ret = ret + x @ params["w_res"] + params["b_res"]
        else:
            ret = ret + x
    if concat:
        ret = jax.nn.elu(ret)
    return ret


if __name__ == "__main__":
    key = jax.random.PRNGKey(0)
    # N != F_OUT exercises the proj_residual path; N / TN >= 2 exercises the tiled,
    # megacore-parallel grid; F_OUT = 128 keeps the output stores lane-dense.
    N, F_IN, F_OUT = 256, 16, 128
    ALPHA = 0.2

    ks = jax.random.split(key, 8)
    x = jax.random.normal(ks[0], (N, F_IN), jnp.float32)
    # Adjacency as an int8 edge mask (1 = edge) for the kernel; the f32 additive 0/-1e9
    # form is built only for the reference (and the exact-semantics float-adj path test).
    edge = jax.random.uniform(ks[1], (N, N)) > 0.5
    adj_mask = edge.astype(jnp.int8)
    adj_bias = jnp.where(edge, 0.0, -1e9).astype(jnp.float32)

    # Deterministic synthetic parameters (shapes per the module's __init__, conv weights
    # stored transposed as (in, out) so h = x @ W).
    params = {
        "w":     0.1 * jax.random.normal(ks[2], (F_IN, F_OUT), jnp.float32),
        "a1":    0.1 * jax.random.normal(ks[3], (F_OUT, 1), jnp.float32),
        "a2":    0.1 * jax.random.normal(ks[4], (F_OUT, 1), jnp.float32),
        "b1":    jnp.full((1,), 0.05, jnp.float32),
        "b2":    jnp.full((1,), -0.03, jnp.float32),
        "w_res": 0.1 * jax.random.normal(ks[5], (F_IN, F_OUT), jnp.float32),
        "b_res": 0.1 * jax.random.normal(ks[6], (1, F_OUT), jnp.float32),
    }

    ref = _reference(x, adj_bias, params, ALPHA, True, True)

    # int8-mask path (dominant-stream optimization)
    out = graph_attention_layer(x, adj_mask, params, alpha=ALPHA, concat=True, residual=True)
    out = jax.block_until_ready(out)
    assert out.shape == (N, F_OUT)
    # Tolerance covers the bf16 h / bf16 attention matmul (f32 accumulation) and the
    # chip-dependent bf16 exp argument.
    assert jnp.allclose(out, ref, atol=2e-2, rtol=2e-2), "mismatch vs JAX reference (mask)"

    # Exact-semantics float-adj path (weighted / additive adjacency kept behind the dtype).
    out_f = graph_attention_layer(x, adj_bias, params, alpha=ALPHA, concat=True, residual=True)
    out_f = jax.block_until_ready(out_f)
    assert jnp.allclose(out_f, ref, atol=2e-2, rtol=2e-2), "mismatch vs JAX reference (f32 adj)"

    print("KERNEL_OK")
</pallas_src>

<mosaic_0001>
module attributes {stable_mosaic.version = 11 : i64} {
  func.func @_gat_kernel(%arg0: i32, %arg1: memref<128x256xi8, #tpu.memory_space<vmem>>, %arg2: memref<128x1xf32, #tpu.memory_space<vmem>>, %arg3: memref<1x256xf32, #tpu.memory_space<vmem>>, %arg4: memref<256x256xbf16, #tpu.memory_space<vmem>>, %arg5: memref<128x128xf32, #tpu.memory_space<vmem>>, %arg6: memref<128x128xf32, #tpu.memory_space<vmem>>) attributes {dimension_semantics = [#tpu.dimension_semantics<parallel>], iteration_bounds = array<i64: 2>, scalar_prefetch = 0 : i64, scratch_operands = 0 : i64, tpu.core_type = #tpu.core_type<tc>, window_params = [{transform_indices = @transform_0, window_bounds = array<i64: 128, 256>}, {transform_indices = @transform_1, window_bounds = array<i64: 128, 1>}, {pipeline_mode = #tpu.pipeline_mode<synchronous>, transform_indices = @transform_2, window_bounds = array<i64: 1, 256>}, {pipeline_mode = #tpu.pipeline_mode<synchronous>, transform_indices = @transform_3, window_bounds = array<i64: 256, 256>}, {transform_indices = @transform_4, window_bounds = array<i64: 128, 128>}, {transform_indices = @transform_5, window_bounds = array<i64: 128, 128>}]} {
    %c0 = arith.constant 0 : index
    %c0_0 = arith.constant 0 : index
    %0 = vector.load %arg2[%c0, %c0_0] : memref<128x1xf32, #tpu.memory_space<vmem>>, vector<128x1xf32>
    %c0_1 = arith.constant 0 : index
    %c0_2 = arith.constant 0 : index
    %1 = vector.load %arg3[%c0_1, %c0_2] : memref<1x256xf32, #tpu.memory_space<vmem>>, vector<1x256xf32>
    %2 = vector.broadcast %0 : vector<128x1xf32> to vector<128x256xf32>
    %3 = vector.broadcast %1 : vector<1x256xf32> to vector<128x256xf32>
    %4 = arith.addf %2, %3 : vector<128x256xf32>
    %cst = arith.constant 2.000000e-01 : f32
    %5 = vector.broadcast %cst : f32 to vector<128x256xf32>
    %6 = arith.mulf %5, %4 : vector<128x256xf32>
    %7 = arith.maximumf %4, %6 : vector<128x256xf32>
    %c0_3 = arith.constant 0 : index
    %c0_4 = arith.constant 0 : index
    %8 = vector.load %arg1[%c0_3, %c0_4] : memref<128x256xi8, #tpu.memory_space<vmem>>, vector<128x256xi8>
    %c0_i8 = arith.constant 0 : i8
    %9 = vector.broadcast %c0_i8 : i8 to vector<128x256xi8>
    %10 = arith.cmpi ne, %8, %9 : vector<128x256xi8>
    %cst_5 = arith.constant -1.000000e+09 : f32
    %11 = vector.broadcast %cst_5 : f32 to vector<128x256xf32>
    %12 = arith.select %10, %7, %11 : vector<128x256xi1>, vector<128x256xf32>
    %cst_6 = arith.constant dense<0xFF800000> : vector<128xf32>
    %13 = vector.multi_reduction <maximumf>, %12, %cst_6 [1] : vector<128x256xf32> to vector<128xf32>
    %14 = vector.shape_cast %13 : vector<128xf32> to vector<128x1xf32>
    %15 = vector.broadcast %14 : vector<128x1xf32> to vector<128x256xf32>
    %16 = arith.subf %12, %15 : vector<128x256xf32>
    %17 = math.exp %16 : vector<128x256xf32>
    %18 = arith.truncf %17 : vector<128x256xf32> to vector<128x256xbf16>
    %c0_7 = arith.constant 0 : index
    %c0_8 = arith.constant 0 : index
    %19 = vector.load %arg4[%c0_7, %c0_8] : memref<256x256xbf16, #tpu.memory_space<vmem>>, vector<256x256xbf16>
    %cst_9 = arith.constant dense<0.000000e+00> : vector<128x256xf32>
    %20 = tpu.matmul %18, %19, %cst_9 {dimension_numbers = #tpu.dot_dimension_numbers<[1], [0], [0], [1], [0, 0, 1, 1], [], []>} : vector<128x256xbf16>, vector<256x256xbf16>, vector<128x256xf32> -> vector<128x256xf32>
    %21 = vector.extract_strided_slice %20 {offsets = [0, 128], sizes = [128, 1], strides = [1, 1]} : vector<128x256xf32> to vector<128x1xf32>
    %22 = vector.extract_strided_slice %20 {offsets = [0, 0], sizes = [128, 128], strides = [1, 1]} : vector<128x256xf32> to vector<128x128xf32>
    %23 = tpu.reciprocal %21 : vector<128x1xf32> -> vector<128x1xf32>
    %24 = vector.broadcast %23 : vector<128x1xf32> to vector<128x128xf32>
    %25 = arith.mulf %22, %24 : vector<128x128xf32>
    %c0_10 = arith.constant 0 : index
    %c0_11 = arith.constant 0 : index
    %26 = vector.load %arg5[%c0_10, %c0_11] : memref<128x128xf32, #tpu.memory_space<vmem>>, vector<128x128xf32>
    %27 = arith.addf %25, %26 : vector<128x128xf32>
    %cst_12 = arith.constant 0.000000e+00 : f32
    %28 = vector.broadcast %cst_12 : f32 to vector<128x128xf32>
    %29 = arith.cmpf ogt, %27, %28 : vector<128x128xf32>
    %cst_13 = arith.constant 0.000000e+00 : f32
    %30 = vector.broadcast %cst_13 : f32 to vector<128x128xf32>
    %31 = arith.minimumf %27, %30 : vector<128x128xf32>
    %32 = math.exp %31 : vector<128x128xf32>
    %cst_14 = arith.constant 1.000000e+00 : f32
    %33 = vector.broadcast %cst_14 : f32 to vector<128x128xf32>
    %34 = arith.subf %32, %33 : vector<128x128xf32>
    %35 = arith.select %29, %27, %34 : vector<128x128xi1>, vector<128x128xf32>
    %c0_15 = arith.constant 0 : index
    %c0_16 = arith.constant 0 : index
    %36 = vector.load %arg6[%c0_15, %c0_16] : memref<128x128xf32, #tpu.memory_space<vmem>>, vector<128x128xf32>
    tpu.vector_store %arg6[%c0_15, %c0_16], %35 {strides = array<i32>} : memref<128x128xf32, #tpu.memory_space<vmem>>, vector<128x128xf32>,
    return
  }
  func.func @transform_0(%arg0: i32) -> (i32, i32) {
    %c0_i32 = arith.constant 0 : i32
    %c0_i32_0 = arith.constant 0 : i32
    return %arg0, %c0_i32 : i32, i32
  }
  func.func @transform_1(%arg0: i32) -> (i32, i32) {
    %c0_i32 = arith.constant 0 : i32
    %c0_i32_0 = arith.constant 0 : i32
    return %arg0, %c0_i32 : i32, i32
  }
  func.func @transform_2(%arg0: i32) -> (i32, i32) {
    %c0_i32 = arith.constant 0 : i32
    %c0_i32_0 = arith.constant 0 : i32
    %c0_i32_1 = arith.constant 0 : i32
    return %c0_i32, %c0_i32_0 : i32, i32
  }
  func.func @transform_3(%arg0: i32) -> (i32, i32) {
    %c0_i32 = arith.constant 0 : i32
    %c0_i32_0 = arith.constant 0 : i32
    %c0_i32_1 = arith.constant 0 : i32
    return %c0_i32, %c0_i32_0 : i32, i32
  }
  func.func @transform_4(%arg0: i32) -> (i32, i32) {
    %c0_i32 = arith.constant 0 : i32
    %c0_i32_0 = arith.constant 0 : i32
    return %arg0, %c0_i32 : i32, i32
  }
  func.func @transform_5(%arg0: i32) -> (i32, i32) {
    %c0_i32 = arith.constant 0 : i32
    %c0_i32_0 = arith.constant 0 : i32
    return %arg0, %c0_i32 : i32, i32
  }
}

</mosaic_0001>

<bundles_post_ra>
// kernel: tpu_custom_call.1
= control target key start
LH: loop header
LB: loop body
LE: loop exit
PB: predicated region body
PF: predicated region fallthrough
CT: control target
= control target key end

     0   :  { %s3273_s0 = inlined_call_operand.hbm [shape: s8[256,256], index: 0, kind: input, shape index: {}]   ;;  %s3274_s1 = inlined_call_operand.vmem [shape: f32[256,1], index: 1, kind: input, shape index: {}]   ;;  %s3275_s2 = inlined_call_operand.vmem [shape: f32[1,256], index: 2, kind: input, shape index: {}]   ;;  %s3276_s3 = inlined_call_operand.vmem [shape: bf16[256,256], index: 3, kind: input, shape index: {}]   ;;  %s3277_s4 = inlined_call_operand.hbm [shape: f32[256,128], index: 4, kind: input, shape index: {}]   ;;  %s3278_s5 = inlined_call_operand.hbm [shape: f32[256,128], index: 5, kind: output, shape index: {}]  }
   0x1   :  { %3280 = sst [smem:[#allocation13_spill]] %s3273_s0 }
   0x2   :  { %10 = vsyncpa [#allocation3], 0 }
   0x3   :  { %12 = vsyncpa [#allocation3 + $0x1], 0 }
   0x4   :  { %13 = vsyncpa [#allocation6], 0 }
   0x5   :  { %15 = vsyncpa [#allocation6 + $0x1], 0 }
   0x6   :  { %16 = vsyncpa [#allocation4], 0 }
   0x7   :  { %18 = vsyncpa [#allocation4 + $0x1], 0  ;;  %s2424_s18 = smov 0   ;;  %s2426_s19 = smov 0  }
   0x8   :  { %s2428_s20 = smov 0   ;;  %s2430_s21 = smov 0  }
   0x9 LB: > { %3281 = sst [smem:[#allocation11_spill]] %s2381_s20  ;;  %s2445_s22 = sadd.s32 4294967295, %s2385_s21   ;;  %s2385_s21 = sphi %s2430_s21, %s3329_s21   ;;  %s2381_s20 = sphi %s2428_s20, %s3326_s20   ;;  %s2377_s19 = sphi %s2426_s19, %s3328_s19   ;;  %s2373_s18 = sphi %s2424_s18, %s3327_s18  }
   0xa   : > { %s1865_s23 = sadd.s32 4294967294, %s2385_s21   ;;  %s2449_s24 = sadd.s32 1, %s2385_s21  }
   0xb   : > { %s31_s25 = sadd.s32 1, %s2381_s20  ;;  %s28_s26 = ssub.s32 %s2385_s21, %s2449_s24 }
   0xc   : > { %p38_p0 = scmp.ne.s32.totalorder %s2381_s20, %s2377_s19  ;;  %p29_p1 = scmp.eq.s32.totalorder %s28_s26, 0 }
   0xd   : > { %p39_p2 = scmp.eq.s32.totalorder %s2385_s21, 0  ;;  %p44_p3 = scmp.ne.s32.totalorder %s2377_s19, %s2373_s18 }
   0xe   : > { %p45_p4 = scmp.eq.s32.totalorder %s2445_s22, 0  ;;  %p162_p7 = scmp.eq.s32.totalorder %s2445_s22, 1 }
   0xf   : > { %s2461_s27 = scalar_select %p29_p1, %s2381_s20, %s31_s25  }
  0x10   : > { %p2463_p5 = por %p39_p2, %p38_p0  ;;  %p2467_p6 = por %p45_p4, %p44_p3 }
  0x11   : > { %3282 = sst [smem:[#allocation12_spill]] %s2461_s27  ;;  %p168_p8 = scmp.eq.s32.totalorder %s1865_s23, 1 }
  0x12   : > { %p2083_p10 = scmp.lt.s32.totalorder %s2385_s21, 2  ;;  %p2474_p11 = por %p162_p7, %p38_p0 }
  0x13   : > { %p2478_p12 = por %p168_p8, %p44_p3  ;;  %s2483_s7 = sand.u32 1, %s2381_s20  }
  0x14   : > { %s2031_s8 = sshll.u32 %s2385_s21, 6  ;;  %s1868_s9 = sshll.u32 %s2483_s7, 6 }
  0x15   : > { %s3287_s0 = sld [smem:[#allocation13_spill]]  ;;  %s198_s14 = scalar_lea.vmem [#allocation2], %s1868_s9 }
  0x16   : > { %s207_s15 = sshll.u32 %s198_s14, 4  ;;  %p2492_p13 = pnand %p2083_p10, %p2463_p5  ;;  %s208_s15 = int_to_ptr.vmem [resolvable:$true] %s207_s15 }
  0x17   : > { %p1875_p0 = scmp.ge.s32.totalorder %s2385_s21, 1  ;;  %p246_p1 = scmp.lt.s32.totalorder %s2385_s21, 3 }
  0x18   : > { %s195_s17 = scalar_lea.sflag [#allocation3], %s2483_s7  ;;  %p2259_p3 = pneg %p2492_p13 }
  0x1b   : > { %s204_s12 = scalar_lea.hbm %s3287_s0, %s2031_s8  ;;  %s2262_s8 = scalar_lea.hbm %s3287_s0, 128 }
  0x1c   : > { %s205_s13 = sshll.u32 %s204_s12, 4  ;;  %s206_s13 = int_to_ptr.hbm [resolvable:$true] %s205_s13 }
  0x1d   : > { %s2255_s23 = sshra.s32 %s206_s13, 4  ;;  %s2256_s23 = int_to_ptr.hbm [resolvable:$true] %s2255_s23 }
  0x1e   : > { %s2257_s25 = scalar_lea.hbm %s2256_s23, 64  ;;  %p2263_p5 = scmp.lt.s32.totalorder %s2256_s23, %s3287_s0 }
  0x1f   : > { %p2258_p2 = scmp.ne.s32.totalorder %s2256_s23, %s2257_s25  ;;  %p2264_p8 = scmp.lt.s32.totalorder %s2262_s8, %s2257_s25 }
  0x21   : > { %p2260_p4 = pnand %p2259_p3, %p2258_p2  ;;  %p2265_p10 = por %p2264_p8, %p2263_p5 }
  0x23   : > { %p2261_p7 = pneg %p2260_p4 }
  0x25   : > { %p2266_p9 = pnand %p2265_p10, %p2261_p7 }
  0x27   : > { %2269 = shalt.err (!%p2266_p9)
}
  0x28   : > { %s2387_s11 = smov 256   ;;  %s2388_s12 = smov 16  }
  0x29   : > { %2075 = dma.hbm_to_vmem [thread:$0]  (!%p2492_p13), %s206_s13, 1024, %s208_s15, %s195_s17, %s2387_s11, %s2387_s11, %s2388_s12  }
  0x2a   : > { %p2516_p2 = pnand %p1875_p0, %p246_p1  ;;  %s1872_s23 = sshll.u32 %s2483_s7, 7 }
  0x2b   : > { %s2032_s25 = sshll.u32 %s2385_s21, 7  ;;  %s230_s10 = scalar_lea.vmem [#allocation5], %s1872_s23 }
  0x2c   : > { %s235_s8 = scalar_lea.hbm %s3277_s4, %s2032_s25  ;;  %s238_s0 = sshll.u32 %s230_s10, 4  ;;  %s239_s0 = int_to_ptr.vmem [resolvable:$true] %s238_s0 }
  0x2d   : > { %s236_s9 = sshll.u32 %s235_s8, 4  ;;  %s227_s27 = scalar_lea.sflag [#allocation6], %s2483_s7  ;;  %s237_s9 = int_to_ptr.hbm [resolvable:$true] %s236_s9 }
  0x2e   : > { %s2285_s20 = sshra.s32 %s237_s9, 4  ;;  %s2292_s11 = scalar_lea.hbm %s3277_s4, 256  ;;  %s2286_s20 = int_to_ptr.hbm [resolvable:$true] %s2285_s20 }
  0x2f   : > { %s2287_s13 = scalar_lea.hbm %s2286_s20, 128  ;;  %p2293_p4 = scmp.lt.s32.totalorder %s2286_s20, %s3277_s4 }
  0x30   : > { %p2288_p9 = scmp.ne.s32.totalorder %s2286_s20, %s2287_s13  ;;  %p2294_p7 = scmp.lt.s32.totalorder %s2292_s11, %s2287_s13 }
  0x32   : > { %p2290_p0 = pnand %p2288_p9, %p2259_p3  ;;  %p2295_p5 = por %p2294_p7, %p2293_p4 }
  0x34   : > { %p2291_p1 = pneg %p2290_p0 }
  0x36   : > { %p2296_p8 = pnand %p2295_p5, %p2291_p1 }
  0x38   : > { %2299 = shalt.err (!%p2296_p8)
}
  0x39   : > { %s2389_s7 = smov 128   ;;  %s2390_s23 = smov 8  }
  0x3a   : > { %2078 = dma.hbm_to_vmem [thread:$0]  (!%p2492_p13), %s237_s9, 2048, %s239_s0, %s227_s27, %s2389_s7, %s2389_s7, %s2390_s23  }
  0x3b   : > { %250 = sbr.rel (%p2516_p2) target bundleno = 790 (0x316), region = 40  ;;  %s2540_s26 = sand.u32 (!%p2516_p2), 1, %s2377_s19  }
  0x3c   : > { %s1876_s28 = sshll.u32 (!%p2516_p2), %s2540_s26, 6  ;;  %s253_s20 = scalar_lea.sflag (!%p2516_p2), [#allocation3], %s2540_s26 }
  0x3d   : > { %s2544_s8 = scalar_lea.vmem (!%p2516_p2), [#allocation2], %s1876_s28 }
  0x40   : > { %2360 = dma.done.wait (%p2467_p6), %s253_s20, 1024  }
  0x41   : > { %2362 = vsyncadd (%p2467_p6), %s253_s20, 4294966272  ;;  %s1877_s0 = sshll.u32 %s2540_s26, 7  ;;  %s263_s27 = scalar_lea.sflag [#allocation6], %s2540_s26 }
  0x42   : > { %s2554_s16 = scalar_lea.vmem [#allocation5], %s1877_s0 }
  0x43   : > { %2364 = dma.done.wait (%p2467_p6), %s263_s27, 2048  }
  0x44   : > { %2366 = vsyncadd (%p2467_p6), %s263_s27, 4294965248  ;;  %s1879_s14 = sshll.u32 %s2445_s22, 4  ;;  %v2391_v0 = vmov 0   ;;  %v513_v14 = vld [vmem:[%s2544_s8] sm:$0xff]  ;;  %v514_v15 = vld [vmem:[%s2544_s8 + $0x8] sm:$0xff]  ;;  %s3165_s11 = scalar_lea.vmem [#allocation7], %s1877_s0 }
  0x45   : > { %2125 = vset.pattern.permute.xlu1 %v2391_v0  ;;  %2124 = vset.pattern.permute.xlu0 %v2391_v0  ;;  %p306_p13 = scmp.lt.s32.totalorder %s1879_s14, 31  ;;  %v515_v16 = vld [vmem:[%s2544_s8 + $0x10] sm:$0xff]  ;;  %v516_v17 = vld [vmem:[%s2544_s8 + $0x18] sm:$0xff]  ;;  %vm521_vm0 = vnez %v513_v14  ;;  %vm522_vm1 = vnez %v514_v15  ;;  %v331_v34 = vld [vmem:[%s3275_s2] sm:$0x3]  ;;  %s2065_s0 = sshll.u32 %s2445_s22, 7 }
  0x46   : > { %2126 = vset.pattern.permute.xlu2 %v2391_v0  ;;  %vm523_vm2 = vnez %v515_v16  ;;  %vm524_vm3 = vnez %v516_v17  ;;  %v529_v18 = vsel %vm521_vm0, 16843009, %v2391_v0  ;;  %v530_v19 = vsel %vm522_vm1, 16843009, %v2391_v0  ;;  %s1753_s25 = scalar_lea.hbm %s3278_s5, %s2065_s0  ;;  %s1754_s7 = sshll.u32 %s3165_s11, 4  ;;  %s1755_s7 = int_to_ptr.vmem [resolvable:$true] %s1754_s7 }
  0x47   : > { %s3331_s14 = smov (!%p306_p13, %s1879_s14), 31  ;;  %v2589_v20 = vsel %vm523_vm2, 16843009, %v2391_v0  ;;  %v2592_v21 = vsel %vm524_vm3, 16843009, %v2391_v0  ;;  %v541_v22 = vunpack.c.2.s8 %v529_v18  ;;  %v542_v23 = vunpack.c.2.s8 %v530_v19  ;;  %s1756_s23 = sshll.u32 %s1753_s25, 4  ;;  %s1757_s23 = int_to_ptr.hbm [resolvable:$true] %s1756_s23 }
  0x48   : > { %s1880_s9 = sshll.u32 %s3331_s14, 3  ;;  %v545_v24 = vunpack.c.0.s8 %v2589_v20  ;;  %v546_v25 = vunpack.c.0.s8 %v2592_v21  ;;  %v537_v26 = vunpack.c.0.s8 %v529_v18  ;;  %v538_v27 = vunpack.c.0.s8 %v530_v19  ;;  %s1742_s22 = scalar_lea.sflag [#allocation4], %s2540_s26 }
  0x49   : > { %s2567_s15 = scalar_lea.vmem %s3274_s1, %s1880_s9  ;;  %v573_v28 = vpack.c.b16 %v542_v23, %v541_v22  ;;  %v543_v32 = vunpack.c.3.s8 %v529_v18  ;;  %v544_v33 = vunpack.c.3.s8 %v530_v19  ;;  %v551_v37 = vunpack.c.3.s8 %v2589_v20  ;;  %s2329_s28 = sshra.s32 %s1757_s23, 4  ;;  %s2330_s28 = int_to_ptr.hbm [resolvable:$true] %s2329_s28 }
  0x4a   : > { %v317_v1 = vld [vmem:[%s2567_s15 + $0x10] sm:$0xff]  ;;  %v315_v2 = vld [vmem:[%s2567_s15] sm:$0xff]  ;;  %v318_v4 = vld [vmem:[%s2567_s15 + $0x18] sm:$0xff]  ;;  %v577_v29 = vpack.c.b16 %v546_v25, %v545_v24  ;;  %v569_v30 = vpack.c.b16 %v538_v27, %v537_v26  ;;  %v2600_v38 = vperm.slane %v331_v34, 0  ;;  %v2602_v39 = vperm.slane %v331_v34, 1  ;;  %s2331_s20 = scalar_lea.hbm %s2330_s28, 128  ;;  %p2336_p2 = scmp.lt.s32.totalorder %s2330_s28, %s3278_s5 }
  0x4b   : > { %v319_v3 = vld [vmem:[%s2567_s15 + $0x20] sm:$0xff]  ;;  %344 = vperm.xlu1 %2125, %v317_v1   ;;  %334 = vperm.xlu0 %2124, %v315_v2   ;;  %v316_v5 = vld [vmem:[%s2567_s15 + $0x8] sm:$0xff]  ;;  %v322_v7 = vld [vmem:[%s2567_s15 + $0x38] sm:$0xff]  ;;  %v574_v31 = vpack.c.b8 %v573_v28, %v573_v28  ;;  %v575_v40 = vpack.c.b16 %v544_v33, %v543_v32  ;;  %v539_v42 = vunpack.c.1.s8 %v529_v18  ;;  %v540_v43 = vunpack.c.1.s8 %v530_v19  ;;  %p2332_p6 = scmp.ne.s32.totalorder %s2330_s28, %s2331_s20  ;;  %s2335_s14 = scalar_lea.hbm %s3278_s5, 256 }
  0x4c   : > { %354 = vperm.xlu2 %2126, %v319_v3   ;;  %v320_v6 = vld [vmem:[%s2567_s15 + $0x28] sm:$0xff]  ;;  %v321_v8 = vld [vmem:[%s2567_s15 + $0x30] sm:$0xff]  ;;  %v323_v10 = vld [vmem:[%s2567_s15 + $0x40] sm:$0xff]  ;;  %v578_v35 = vpack.c.b8 %v577_v29, %v577_v29  ;;  %v570_v36 = vpack.c.b8 %v569_v30, %v569_v30  ;;  %v552_v44 = vunpack.c.3.s8 %v2592_v21  ;;  %v547_v46 = vunpack.c.1.s8 %v2589_v20  ;;  %p2337_p9 = scmp.lt.s32.totalorder %s2335_s14, %s2331_s20 }
  0x4d   : > { %v325_v9 = vld [vmem:[%s2567_s15 + $0x50] sm:$0xff]  ;;  %v326_v11 = vld [vmem:[%s2567_s15 + $0x58] sm:$0xff]  ;;  %v327_v12 = vld [vmem:[%s2567_s15 + $0x60] sm:$0xff]  ;;  %vm603_vm4 = vnez %v574_v31  ;;  %v548_v47 = vunpack.c.1.s8 %v2592_v21  ;;  %v576_v52 = vpack.c.b8 %v575_v40, %v575_v40  ;;  %v571_v54 = vpack.c.b16 %v540_v43, %v539_v42  ;;  %p2333_p3 = pnand %p2332_p6, %p2474_p11 }
  0x4e   : > { %v324_v13 = vld [vmem:[%s2567_s15 + $0x48] sm:$0xff]  ;;  %vm605_vm5 = vnez %v578_v35  ;;  %vm601_vm6 = vnez %v570_v36  ;;  %v619_v49 = vsel %vm603_vm4, 16843009, %v2391_v0  ;;  %v2610_v50 = vpack.c.b16 %v552_v44, %v551_v37  ;;  %p2338_p0 = por %p2337_p9, %p2336_p2 }
  0x4f   : > { %v621_v51 = vsel %vm605_vm5, 16843009, %v2391_v0  ;;  %v617_v53 = vsel %vm601_vm6, 16843009, %v2391_v0  ;;  %v637_v56 = vunpack.c.0.s8 %v619_v49  ;;  %v638_v57 = vunpack.c.1.s8 %v619_v49  ;;  %p2334_p10 = pneg %p2333_p3 }
  0x50   : > { %v579_v58 = vpack.c.b16 %v548_v47, %v547_v46  ;;  %v641_v60 = vunpack.c.0.s8 %v621_v51  ;;  %v642_v61 = vunpack.c.1.s8 %v621_v51  ;;  %v633_v62 = vunpack.c.0.s8 %v617_v53 }
  0x51   : > { %vm604_vm7 = vnez %v576_v52  ;;  %v634_v63 = vunpack.c.1.s8 %v617_v53  ;;  %v572_v1 = vpack.c.b8 %v571_v54, %v571_v54  ;;  %v549_v2 = vunpack.c.2.s8 %v2589_v20  ;;  %p2339_p1 = pnand %p2338_p0, %p2334_p10 }
  0x52   : > { %v550_v3 = vunpack.c.2.s8 %v2592_v21  ;;  %vm2616_vm8 = vcmp.ne.s32.totalorder %v637_v56, 0  ;;  %vm2620_vm9 = vcmp.ne.s32.totalorder %v638_v57, 0  ;;  %vm2624_vm10 = vcmp.ne.s32.totalorder %v641_v60, 0 }
  0x53   : > { %349 = vperm.xlu1 %2125, %v318_v4   ;;  %339 = vperm.xlu0 %2124, %v316_v5   ;;  %vm2628_vm11 = vcmp.ne.s32.totalorder %v642_v61, 0  ;;  %vm2637_vm12 = vcmp.ne.s32.totalorder %v633_v62, 0  ;;  %vm2641_vm13 = vcmp.ne.s32.totalorder %v634_v63, 0  ;;  %vm602_vm14 = vnez %v572_v1 }
  0x54   : > { %359 = vperm.xlu2 %2126, %v320_v6   ;;  %v581_v20 = vpack.c.b16 %v550_v3, %v549_v2  ;;  %v618_v31 = vsel %vm602_vm14, 16843009, %v2391_v0 }
  0x55   : > { %v635_v47 = vunpack.c.0.s8 %v618_v31 }
  0x56   : > { %v582_v36 = vpack.c.b8 %v581_v20, %v581_v20 }
  0x57   : > { %vm667_vm3 = vcmp.ne.s32.totalorder %v635_v47, 0 }
  0x58   : > { %vm607_vm1 = vnez %v582_v36  ;;  %v329_v36 = vld [vmem:[%s2567_s15 + $0x70] sm:$0xff] }
  0x59   : > { %v623_v1 = vsel %vm607_vm1, 16843009, %v2391_v0 }
  0x5b   : > { %369 = vperm.xlu1 %2125, %v322_v7   ;;  %364 = vperm.xlu0 %2124, %v321_v8   ;;  %v580_v7 = vpack.c.b8 %v579_v58, %v579_v58 }
  0x5c   : > { %384 = vperm.xlu2 %2126, %v325_v9  }
  0x5d   : > { %vm606_vm15 = vnez %v580_v7 }
  0x5e   : > { %v622_v35 = vsel %vm606_vm15, 16843009, %v2391_v0 }
  0x63   : > { %374 = vperm.xlu1 %2125, %v323_v10   ;;  %389 = vperm.xlu0 %2124, %v326_v11  }
  0x64   : > { %394 = vperm.xlu2 %2126, %v327_v12  }
  0x6b   : > { %379 = vperm.xlu1 %2125, %v324_v13   ;;  %v620_v13 = vsel %vm604_vm7, 16843009, %v2391_v0 }
  0x6c   : > { %v639_v27 = vunpack.c.0.s8 %v620_v13  ;;  %v640_v34 = vunpack.c.1.s8 %v620_v13  ;;  %v644_v13 = vunpack.c.1.s8 %v622_v35 }
  0x6e   : > { %vm2681_vm0 = vcmp.ne.s32.totalorder %v639_v27, 0  ;;  %vm672_vm2 = vcmp.ne.s32.totalorder %v640_v34, 0  ;;  %vm676_vm6 = vcmp.ne.s32.totalorder %v644_v13, 0  ;;  %v517_v34 = vld [vmem:[%s2544_s8 + $0x20] sm:$0xff] }
  0xa6   : > { %v355_v41 = vpop.permute.xlu2 %354 }
  0xa7   : > { %v425_v45 = vadd.f32 %v2600_v38, %v355_v41  ;;  %v426_v48 = vadd.f32 %v2602_v39, %v355_v41 }
  0xa9   : > { %v457_v55 = vmul.f32 0.2, %v425_v45  ;;  %v458_v59 = vmul.f32 0.2, %v426_v48 }
  0xab   : > { %v489_v4 = vmax.f32 %v425_v45, %v457_v55  ;;  %v490_v8 = vmax.f32 %v426_v48, %v458_v59  ;;  %v636_v48 = vunpack.c.1.s8 %v618_v31 }
  0xad   : > { %v2647_v25 = vsel %vm2624_vm10, %v489_v4, -1e+09  ;;  %v2651_v26 = vsel %vm2628_vm11, %v490_v8, -1e+09  ;;  %vm668_vm4 = vcmp.ne.s32.totalorder %v636_v48, 0 }
  0xae   : > { %v360_v32 = vpop.permute.xlu2 %359  ;;  %v741_v5 = vmax.f32 %v2647_v25, %v2651_v26 }
  0xaf   : > { %v427_v37 = vadd.f32 %v2600_v38, %v360_v32  ;;  %v428_v54 = vadd.f32 %v2602_v39, %v360_v32 }
  0xb1   : > { %v459_v2 = vmul.f32 0.2, %v427_v37  ;;  %v460_v3 = vmul.f32 0.2, %v428_v54 }
  0xb3   : > { %v491_v19 = vmax.f32 %v427_v37, %v459_v2  ;;  %v492_v20 = vmax.f32 %v428_v54, %v460_v3  ;;  %v519_v2 = vld [vmem:[%s2544_s8 + $0x30] sm:$0xff] }
  0xb4   : > { %vm527_vm14 = vnez %v519_v2  ;;  %v2048_v2 = vld [vmem:[%s3276_s3 + $0x74] sm:$0xf0] }
  0xbd   : > { %v345_v9 = vpop.permute.xlu1 %344  ;;  %v335_v10 = vpop.permute.xlu0 %334 }
  0xbe   : > { %v421_v14 = vadd.f32 %v2600_v38, %v345_v9  ;;  %v422_v15 = vadd.f32 %v2602_v39, %v345_v9  ;;  %v417_v16 = vadd.f32 %v2600_v38, %v335_v10  ;;  %v418_v17 = vadd.f32 %v2602_v39, %v335_v10 }
  0xbf   : > { %v643_v9 = vunpack.c.0.s8 %v622_v35  ;;  %v518_v35 = vld [vmem:[%s2544_s8 + $0x28] sm:$0xff] }
  0xc0   : > { %v453_v21 = vmul.f32 0.2, %v421_v14  ;;  %v454_v22 = vmul.f32 0.2, %v422_v15  ;;  %v449_v23 = vmul.f32 0.2, %v417_v16  ;;  %vm526_vm10 = vnez %v518_v35 }
  0xc1   : > { %v450_v24 = vmul.f32 0.2, %v418_v17  ;;  %vm675_vm5 = vcmp.ne.s32.totalorder %v643_v9, 0  ;;  %v385_v9 = vpop.permute.xlu2 %384  ;;  %v2754_v35 = vsel %vm527_vm14, 16843009, %v2391_v0 }
  0xc2   : > { %v485_v28 = vmax.f32 %v421_v14, %v453_v21  ;;  %v486_v29 = vmax.f32 %v422_v15, %v454_v22  ;;  %v481_v30 = vmax.f32 %v417_v16, %v449_v23  ;;  %v645_v14 = vunpack.c.0.s8 %v623_v1 }
  0xc3   : > { %v482_v33 = vmax.f32 %v418_v17, %v450_v24  ;;  %v646_v17 = vunpack.c.1.s8 %v623_v1  ;;  %v2704_v27 = vsel %vm675_vm5, %v491_v19, -1e+09  ;;  %v2005_v19 = vld [vmem:[%s3276_s3 + $0xf8] sm:$0xf0] }
  0xc4   : > { %v2658_v40 = vsel %vm2616_vm8, %v485_v28, -1e+09  ;;  %v2662_v41 = vsel %vm2620_vm9, %v486_v29, -1e+09  ;;  %v2666_v42 = vsel %vm2637_vm12, %v481_v30, -1e+09  ;;  %vm525_vm9 = vnez %v517_v34 }
  0xc5   : > { %v350_v43 = vpop.permute.xlu1 %349  ;;  %v340_v44 = vpop.permute.xlu0 %339  ;;  %v735_v45 = vmax.f32 %v2658_v40, %v2662_v41  ;;  %v2672_v46 = vsel %vm2641_vm13, %v482_v33, -1e+09  ;;  %vm677_vm7 = vcmp.ne.s32.totalorder %v645_v14, 0  ;;  %vm678_vm8 = vcmp.ne.s32.totalorder %v646_v17, 0  ;;  %v328_v33 = vld [vmem:[%s2567_s15 + $0x68] sm:$0xff] }
  0xc6   : > { %v423_v49 = vadd.f32 %v2600_v38, %v350_v43  ;;  %v424_v51 = vadd.f32 %v2602_v39, %v350_v43  ;;  %v419_v52 = vadd.f32 %v2600_v38, %v340_v44  ;;  %v420_v53 = vadd.f32 %v2602_v39, %v340_v44  ;;  %v330_v43 = vld [vmem:[%s2567_s15 + $0x78] sm:$0xff] }
  0xc7   : > { %736 = vmax.xlane.f32.xlu1 %v735_v45  ;;  %v729_v55 = vmax.f32 %v2666_v42, %v2672_v46  ;;  %v2706_v28 = vsel %vm676_vm6, %v492_v20, -1e+09  ;;  %v533_v44 = vsel %vm525_vm9, 16843009, %v2391_v0  ;;  %v534_v45 = vsel %vm526_vm10, 16843009, %v2391_v0 }
  0xc8   : > { %v455_v57 = vmul.f32 0.2, %v423_v49  ;;  %v456_v58 = vmul.f32 0.2, %v424_v51  ;;  %v451_v59 = vmul.f32 0.2, %v419_v52  ;;  %v744_v31 = vmax.f32 %v2704_v27, %v2706_v28 }
  0xc9   : > { %v452_v60 = vmul.f32 0.2, %v420_v53  ;;  %730 = vmax.xlane.f32.xlu2 %v729_v55  ;;  %v553_v47 = vunpack.c.0.s8 %v533_v44  ;;  %v554_v48 = vunpack.c.0.s8 %v534_v45  ;;  %v555_v54 = vunpack.c.1.s8 %v533_v44 }
  0xca   : > { %v487_v61 = vmax.f32 %v423_v49, %v455_v57  ;;  %v488_v62 = vmax.f32 %v424_v51, %v456_v58  ;;  %v483_v63 = vmax.f32 %v419_v52, %v451_v59  ;;  %v557_v49 = vunpack.c.2.s8 %v533_v44 }
  0xcb   : > { %v484_v4 = vmax.f32 %v420_v53, %v452_v60  ;;  %v558_v51 = vunpack.c.2.s8 %v534_v45  ;;  %v584_v52 = vpack.c.b8 %v2610_v50, %v2610_v50  ;;  %v585_v53 = vpack.c.b16 %v554_v48, %v553_v47 }
  0xcc   : > { %v2690_v6 = vsel %vm2681_vm0, %v487_v61, -1e+09  ;;  %v2692_v7 = vsel %vm672_vm2, %v488_v62, -1e+09  ;;  %v2694_v8 = vsel %vm667_vm3, %v483_v63, -1e+09  ;;  %v556_v55 = vunpack.c.1.s8 %v534_v45 }
  0xcd   : > { %v365_v10 = vpop.permute.xlu0 %364  ;;  %v738_v11 = vmax.f32 %v2690_v6, %v2692_v7  ;;  %v2698_v12 = vsel %vm668_vm4, %v484_v4, -1e+09  ;;  %v370_v37 = vpop.permute.xlu1 %369  ;;  %v589_v56 = vpack.c.b16 %v558_v51, %v557_v49  ;;  %vm608_vm11 = vnez %v584_v52 }
  0xce   : > { %v429_v15 = vadd.f32 %v2600_v38, %v365_v10  ;;  %v430_v16 = vadd.f32 %v2602_v39, %v365_v10  ;;  %v732_v18 = vmax.f32 %v2694_v8, %v2698_v12  ;;  %v586_v58 = vpack.c.b8 %v585_v53, %v585_v53 }
  0xcf   : > { %742 = vmax.xlane.f32.xlu1 %v741_v5  ;;  %v587_v59 = vpack.c.b16 %v556_v55, %v555_v54  ;;  %v590_v60 = vpack.c.b8 %v589_v56, %v589_v56  ;;  %v624_v61 = vsel %vm608_vm11, 16843009, %v2391_v0  ;;  %v431_v62 = vadd.f32 %v2600_v38, %v370_v37  ;;  %v520_v5 = vld [vmem:[%s2544_s8 + $0x38] sm:$0xff] }
  0xd0   : > { %v461_v21 = vmul.f32 0.2, %v429_v15  ;;  %v462_v22 = vmul.f32 0.2, %v430_v16  ;;  %733 = vmax.xlane.f32.xlu0 %v732_v18  ;;  %v432_v63 = vadd.f32 %v2602_v39, %v370_v37  ;;  %vm609_vm12 = vnez %v586_v58 }
  0xd1   : > { %739 = vmax.xlane.f32.xlu2 %v738_v11  ;;  %v588_v1 = vpack.c.b8 %v587_v59, %v587_v59  ;;  %vm611_vm13 = vnez %v590_v60  ;;  %v647_v50 = vunpack.c.0.s8 %v624_v61  ;;  %v648_v3 = vunpack.c.1.s8 %v624_v61 }
  0xd2   : > { %v493_v23 = vmax.f32 %v429_v15, %v461_v21  ;;  %v494_v24 = vmax.f32 %v430_v16, %v462_v22  ;;  %v625_v4 = vsel %vm609_vm12, 16843009, %v2391_v0  ;;  %v463_v10 = vmul.f32 0.2, %v431_v62 }
  0xd3   : > { %v464_v11 = vmul.f32 0.2, %v432_v63  ;;  %v627_v13 = vsel %vm611_vm13, 16843009, %v2391_v0  ;;  %vm610_vm15 = vnez %v588_v1  ;;  %v2733_v14 = vadd.f32 %v2600_v38, %v385_v9  ;;  %v1939_v1 = vld [vmem:[%s3276_s3 + $0x70] sm:$0xf] }
  0xd4   : > { %v2708_v29 = vsel %vm677_vm7, %v493_v23, -1e+09  ;;  %v2710_v30 = vsel %vm678_vm8, %v494_v24, -1e+09  ;;  %v2736_v15 = vadd.f32 %v2602_v39, %v385_v9  ;;  %v559_v16 = vunpack.c.3.s8 %v533_v44  ;;  %v2047_v9 = vld [vmem:[%s3276_s3 + $0x74] sm:$0xf] }
  0xd5   : > { %v747_v32 = vmax.f32 %v2708_v29, %v2710_v30  ;;  %v375_v57 = vpop.permute.xlu1 %374  ;;  %v560_v17 = vunpack.c.3.s8 %v534_v45  ;;  %vm2738_vm0 = vcmp.ne.s32.totalorder %v647_v50, 0  ;;  %v649_v20 = vunpack.c.0.s8 %v625_v4  ;;  %v2003_v50 = vld [vmem:[%s3276_s3 + $0xf0] sm:$0xf] }
  0xd6   : > { %v650_v21 = vunpack.c.1.s8 %v625_v4  ;;  %vm528_vm1 = vnez %v520_v5  ;;  %vm2742_vm2 = vcmp.ne.s32.totalorder %v648_v3, 0  ;;  %v653_v23 = vunpack.c.0.s8 %v627_v13  ;;  %v2064_v5 = vld [vmem:[%s3276_s3 + $0xf4] sm:$0xf0] }
  0xd7   : > { %v654_v24 = vunpack.c.1.s8 %v627_v13  ;;  %v2750_v34 = vadd.f32 %v2600_v38, %v375_v57  ;;  %v2766_v44 = vsel %vm528_vm1, 16843009, %v2391_v0  ;;  %v2769_v45 = vmul.f32 0.2, %v2733_v14 }
  0xd8   : > { %745 = vmax.xlane.f32.xlu0 %v744_v31  ;;  %v2747_v31 = vsel %vm610_vm15, 16843009, %v2391_v0  ;;  %v2772_v47 = vmul.f32 0.2, %v2736_v15  ;;  %vm2775_vm3 = vcmp.ne.s32.totalorder %v649_v20, 0  ;;  %vm2779_vm4 = vcmp.ne.s32.totalorder %v650_v21, 0 }
  0xd9   : > { %748 = vmax.xlane.f32.xlu2 %v747_v32  ;;  %v495_v32 = vmax.f32 %v431_v62, %v463_v10  ;;  %v651_v48 = vunpack.c.0.s8 %v2747_v31  ;;  %v591_v52 = vpack.c.b16 %v560_v17, %v559_v16  ;;  %v561_v53 = vunpack.c.0.s8 %v2754_v35  ;;  %v1941_v10 = vld [vmem:[%s3276_s3 + $0x78] sm:$0xf0]  ;;  %v1931_v20 = vld [vmem:[%s3276_s3 + $0x60] sm:$0xf] }
  0xda   : > { %v2785_v54 = vmul.f32 0.2, %v2750_v34  ;;  %vm2795_vm5 = vcmp.ne.s32.totalorder %v653_v23, 0  ;;  %v562_v58 = vunpack.c.0.s8 %v2766_v44  ;;  %vm2809_vm6 = vcmp.ne.s32.totalorder %v654_v24, 0  ;;  %v390_v23 = vpop.permute.xlu0 %389 }
  0xdb   : > { %v2789_v55 = vsel %vm2738_vm0, %v495_v32, -1e+09  ;;  %vm2813_vm7 = vcmp.ne.s32.totalorder %v651_v48, 0  ;;  %v592_v3 = vpack.c.b8 %v591_v52, %v591_v52  ;;  %v1940_v4 = vor.u32 %v2048_v2, %v1939_v1  ;;  %v2046_v32 = vld [vmem:[%s3276_s3 + $0x64] sm:$0xf0] }
  0xdc   : > { %v593_v13 = vpack.c.b16 %v562_v58, %v561_v53  ;;  %v2004_v16 = vor.u32 %v2064_v5, %v2003_v50  ;;  %v1944_v17 = vor.u32 %v2047_v9, %v1941_v10  ;;  %v501_v21 = vmax.f32 %v2733_v14, %v2769_v45  ;;  %v2062_v48 = vld [vmem:[%s3276_s3 + $0xe4] sm:$0xf0]  ;;  %v2045_v53 = vld [vmem:[%s3276_s3 + $0x64] sm:$0xf]  ;;  %v1997_v2 = vld [vmem:[%s3276_s3 + $0xe8] sm:$0xf0] }
  0xdd   : > { %v380_v18 = vpop.permute.xlu1 %379  ;;  %v497_v22 = vmax.f32 %v2750_v34, %v2785_v54  ;;  %1081 = vmatpush.bf16.msra.mxu0 %v1940_v4  ;;  %v652_v34 = vunpack.c.1.s8 %v2747_v31  ;;  %v1932_v45 = vor.u32 %v2046_v32, %v1931_v20  ;;  %v1933_v54 = vld [vmem:[%s3276_s3 + $0x68] sm:$0xf0]  ;;  %v2061_v58 = vld [vmem:[%s3276_s3 + $0xe4] sm:$0xf]  ;;  %vm2874_vm8 = vnez %v592_v3  ;;  %v1923_v50 = vld [vmem:[%s3276_s3 + $0x50] sm:$0xf] }
  0xde   : > { %v2760_v37 = vadd.f32 %v2600_v38, %v380_v18  ;;  %1130 = vmatpush.bf16.msra.mxu1 %v2004_v16  ;;  %1179 = vmatpush.bf16.msra.mxu2 %v1944_v17  ;;  %v1936_v1 = vor.u32 %v2045_v53, %v1933_v54  ;;  %v594_v4 = vpack.c.b8 %v593_v13, %v593_v13  ;;  %v1987_v9 = vld [vmem:[%s3276_s3 + $0xd0] sm:$0xf]  ;;  %v2060_v10 = vld [vmem:[%s3276_s3 + $0xd4] sm:$0xf0]  ;;  %v2043_v16 = vld [vmem:[%s3276_s3 + $0x54] sm:$0xf] }
  0xdf   : > { %v2000_v5 = vor.u32 %v2061_v58, %v1997_v2  ;;  %v440_v17 = vadd.f32 %v2602_v39, %v390_v23  ;;  %v1925_v20 = vld [vmem:[%s3276_s3 + $0x58] sm:$0xf0]  ;;  %vm2921_vm9 = vcmp.ne.s32.totalorder %v652_v34, 0  ;;  %v628_v49 = vsel %vm2874_vm8, 16843009, %v2391_v0 }
  0xe0   : > { %v2804_v60 = vmul.f32 0.2, %v2760_v37  ;;  %v1928_v51 = vor.u32 %v2043_v16, %v1925_v20  ;;  %vm613_vm10 = vnez %v594_v4  ;;  %v1979_v16 = vld [vmem:[%s3276_s3 + $0xc0] sm:$0xf] }
  0xe1   : > { %1082 = vmatpush.bf16.msra.mxu0 %v1932_v45  ;;  %v472_v34 = vmul.f32 0.2, %v440_v17  ;;  %v655_v45 = vunpack.c.0.s8 %v628_v49  ;;  %v629_v62 = vsel %vm613_vm10, 16843009, %v2391_v0 }
  0xe2   : > { %1180 = vmatpush.bf16.msra.mxu2 %v1936_v1  ;;  %v657_v1 = vunpack.c.0.s8 %v629_v62  ;;  %v658_v2 = vunpack.c.1.s8 %v629_v62 }
  0xe3   : > { %vm687_vm11 = vcmp.ne.s32.totalorder %v655_v45, 0  ;;  %v1909_v45 = vld [vmem:[%s3276_s3 + $0x38] sm:$0xf0] }
  0xe4   : > { %vm689_vm13 = vcmp.ne.s32.totalorder %v657_v1, 0  ;;  %vm690_vm14 = vcmp.ne.s32.totalorder %v658_v2, 0  ;;  %v2054_v2 = vld [vmem:[%s3276_s3 + $0xa4] sm:$0xf0] }
  0xe6   : > { %1181 = vmatpush.bf16.msra.mxu2 %v1928_v51  ;;  %v1971_v51 = vld [vmem:[%s3276_s3 + $0xb0] sm:$0xf] }
  0xe8   : > { %399 = vperm.xlu1 %2125, %v328_v33   ;;  %v496_v33 = vmax.f32 %v432_v63, %v464_v11  ;;  %v395_v11 = vpop.permute.xlu2 %394 }
  0xe9   : > { %v2872_v31 = vadd.f32 %v2600_v38, %v395_v11  ;;  %v442_v32 = vadd.f32 %v2602_v39, %v395_v11 }
  0xea   : > { %v2793_v56 = vsel %vm2742_vm2, %v496_v33, -1e+09  ;;  %v1995_v33 = vld [vmem:[%s3276_s3 + $0xe0] sm:$0xf] }
  0xeb   : > { %v1996_v52 = vor.u32 %v2062_v48, %v1995_v33  ;;  %v750_v3 = vmax.f32 %v2789_v55, %v2793_v56  ;;  %v2928_v33 = vsel %vm2795_vm5, %v501_v21, -1e+09  ;;  %v473_v54 = vmul.f32 0.2, %v2872_v31 }
  0xec   : > { %404 = vperm.xlu0 %2124, %v329_v36   ;;  %v2757_v36 = vadd.f32 %v2602_v39, %v375_v57  ;;  %v474_v58 = vmul.f32 0.2, %v442_v32 }
  0xed   : > { %1131 = vmatpush.bf16.msra.mxu1 %v1996_v52  ;;  %v656_v52 = vunpack.c.1.s8 %v628_v49  ;;  %v2040_v49 = vld [vmem:[%s3276_s3 + $0x34] sm:$0xf0] }
  0xee   : > { %v2801_v59 = vmul.f32 0.2, %v2757_v36 }
  0xef   : > { %vm688_vm12 = vcmp.ne.s32.totalorder %v656_v52, 0  ;;  %v2055_v52 = vld [vmem:[%s3276_s3 + $0xb4] sm:$0xf] }
  0xf0   : > { %v498_v14 = vmax.f32 %v2757_v36, %v2801_v59  ;;  %v502_v36 = vmax.f32 %v2736_v15, %v2772_v47  ;;  %v2044_v15 = vld [vmem:[%s3276_s3 + $0x54] sm:$0xf0]  ;;  %v439_v47 = vadd.f32 %v2600_v38, %v390_v23  ;;  %v1989_v23 = vld [vmem:[%s3276_s3 + $0xd8] sm:$0xf0]  ;;  %v504_v59 = vmax.f32 %v440_v17, %v472_v34 }
  0xf1   : > { %409 = vperm.xlu2 %2126, %v330_v43   ;;  %v2763_v43 = vadd.f32 %v2602_v39, %v380_v18  ;;  %v2063_v18 = vld [vmem:[%s3276_s3 + $0xf4] sm:$0xf] }
  0xf2   : > { %v2008_v24 = vor.u32 %v2063_v18, %v2005_v19  ;;  %v499_v18 = vmax.f32 %v2760_v37, %v2804_v60  ;;  %v1924_v19 = vor.u32 %v2044_v15, %v1923_v50  ;;  %v2915_v37 = vsel %vm2775_vm3, %v497_v22, -1e+09  ;;  %v1981_v60 = vld [vmem:[%s3276_s3 + $0xc8] sm:$0xf0] }
  0xf3   : > { %v2807_v61 = vmul.f32 0.2, %v2763_v43  ;;  %v471_v22 = vmul.f32 0.2, %v439_v47  ;;  %v2935_v48 = vsel %vm2809_vm6, %v502_v36, -1e+09  ;;  %v505_v50 = vmax.f32 %v2872_v31, %v473_v54 }
  0xf4   : > { %1228 = vmatpush.bf16.msra.mxu3 %v2008_v24  ;;  %v2059_v24 = vld [vmem:[%s3276_s3 + $0xd4] sm:$0xf]  ;;  %v2941_v11 = vsel %vm2813_vm7, %v499_v18, -1e+09  ;;  %1083 = vmatpush.bf16.msra.mxu0 %v1924_v19  ;;  %v759_v53 = vmax.f32 %v2928_v33, %v2935_v48  ;;  %v506_v15 = vmax.f32 %v442_v32, %v474_v58  ;;  %v2956_v4 = vsel %vm688_vm12, %v504_v59, -1e+09 }
  0xf5   : > { %v500_v13 = vmax.f32 %v2763_v43, %v2807_v61  ;;  %v2919_v43 = vsel %vm2779_vm4, %v498_v14, -1e+09  ;;  %v1988_v61 = vor.u32 %v2060_v10, %v1987_v9  ;;  %v1992_v14 = vor.u32 %v2059_v24, %v1989_v23  ;;  %v1915_v10 = vld [vmem:[%s3276_s3 + $0x40] sm:$0xf]  ;;  %v2042_v31 = vld [vmem:[%s3276_s3 + $0x44] sm:$0xf0] }
  0xf6   : > { %v753_v57 = vmax.f32 %v2915_v37, %v2919_v43  ;;  %v503_v36 = vmax.f32 %v439_v47, %v471_v22  ;;  %v2960_v47 = vsel %vm689_vm13, %v505_v50, -1e+09  ;;  %v2962_v9 = vsel %vm690_vm14, %v506_v15, -1e+09  ;;  %v2058_v18 = vld [vmem:[%s3276_s3 + $0xc4] sm:$0xf0] }
  0xf7   : > { %v2945_v21 = vsel %vm2921_vm9, %v500_v13, -1e+09  ;;  %1132 = vmatpush.bf16.msra.mxu1 %v1988_v61  ;;  %v1916_v17 = vor.u32 %v2042_v31, %v1915_v10  ;;  %v2041_v13 = vld [vmem:[%s3276_s3 + $0x44] sm:$0xf]  ;;  %v1917_v19 = vld [vmem:[%s3276_s3 + $0x48] sm:$0xf0]  ;;  %v1980_v20 = vor.u32 %v2058_v18, %v1979_v16 }
  0xf8   : > { %1229 = vmatpush.bf16.msra.mxu3 %v2000_v5  ;;  %v756_v63 = vmax.f32 %v2941_v11, %v2945_v21  ;;  %v1920_v24 = vor.u32 %v2041_v13, %v1917_v19  ;;  %v2057_v23 = vld [vmem:[%s3276_s3 + $0xc4] sm:$0xf]  ;;  %v1907_v61 = vld [vmem:[%s3276_s3 + $0x30] sm:$0xf]  ;;  %v2056_v22 = vld [vmem:[%s3276_s3 + $0xb4] sm:$0xf0] }
  0xf9   : > { %1084 = vmatpush.bf16.msra.mxu0 %v1916_v17  ;;  %v1984_v32 = vor.u32 %v2057_v23, %v1981_v60  ;;  %v1972_v34 = vor.u32 %v2056_v22, %v1971_v51  ;;  %v1899_v58 = vld [vmem:[%s3276_s3 + $0x20] sm:$0xf]  ;;  %v2037_v50 = vld [vmem:[%s3276_s3 + $0x24] sm:$0xf]  ;;  %v1901_v15 = vld [vmem:[%s3276_s3 + $0x28] sm:$0xf0] }
  0xfa   : > { %1182 = vmatpush.bf16.msra.mxu2 %v1920_v24  ;;  %v1963_v59 = vld [vmem:[%s3276_s3 + $0xa0] sm:$0xf]  ;;  %v1904_v10 = vor.u32 %v2037_v50, %v1901_v15  ;;  %v2053_v31 = vld [vmem:[%s3276_s3 + $0xa4] sm:$0xf]  ;;  %v1965_v16 = vld [vmem:[%s3276_s3 + $0xa8] sm:$0xf0]  ;;  %v567_v15 = vunpack.c.3.s8 %v2754_v35 }
  0xfb   : > { %1133 = vmatpush.bf16.msra.mxu1 %v1980_v20  ;;  %v1891_v17 = vld [vmem:[%s3276_s3 + $0x10] sm:$0xf]  ;;  %v1968_v18 = vor.u32 %v2053_v31, %v1965_v16  ;;  %v2036_v13 = vld [vmem:[%s3276_s3 + $0x14] sm:$0xf0]  ;;  %v2035_v60 = vld [vmem:[%s3276_s3 + $0x14] sm:$0xf] }
  0xfc   : > { %1230 = vmatpush.bf16.msra.mxu3 %v1992_v14  ;;  %v1908_v14 = vor.u32 %v2040_v49, %v1907_v61  ;;  %v1955_v19 = vld [vmem:[%s3276_s3 + $0x90] sm:$0xf]  ;;  %v2052_v20 = vld [vmem:[%s3276_s3 + $0x94] sm:$0xf0]  ;;  %v1892_v24 = vor.u32 %v2036_v13, %v1891_v17  ;;  %v1893_v61 = vld [vmem:[%s3276_s3 + $0x18] sm:$0xf0] }
  0xfd   : > { %v1956_v23 = vor.u32 %v2052_v20, %v1955_v19  ;;  %v1896_v49 = vor.u32 %v2035_v60, %v1893_v61  ;;  %v1957_v51 = vld [vmem:[%s3276_s3 + $0x98] sm:$0xf0] }
  0xfe   : > { %1085 = vmatpush.bf16.msra.mxu0 %v1908_v14  ;;  %v1883_v14 = vld [vmem:[%s3276_s3] sm:$0xf] }
  0xff   : > { %1134 = vmatpush.bf16.msra.mxu1 %v1972_v34  ;;  %v2034_v34 = vld [vmem:[%s3276_s3 + $0x4] sm:$0xf0] }
 0x100   : > { %1231 = vmatpush.bf16.msra.mxu3 %v1984_v32  ;;  %v2051_v32 = vld [vmem:[%s3276_s3 + $0x94] sm:$0xf] }
 0x101   : > { %v1960_v22 = vor.u32 %v2051_v32, %v1957_v51 }
 0x112   : > { %751 = vmax.xlane.f32.xlu1 %v750_v3  ;;  %v2954_v3 = vsel %vm687_vm11, %v503_v36, -1e+09  ;;  %v2038_v36 = vld [vmem:[%s3276_s3 + $0x24] sm:$0xf0] }
 0x113   : > { %v762_v5 = vmax.f32 %v2954_v3, %v2956_v4  ;;  %v1900_v1 = vor.u32 %v2038_v36, %v1899_v58  ;;  %v2049_v58 = vld [vmem:[%s3276_s3 + $0x84] sm:$0xf]  ;;  %v1949_v36 = vld [vmem:[%s3276_s3 + $0x88] sm:$0xf0] }
 0x115   : > { %1086 = vmatpush.bf16.msra.mxu0 %v1900_v1 }
 0x116   : > { %754 = vmax.xlane.f32.xlu0 %v753_v57  ;;  %v2039_v57 = vld [vmem:[%s3276_s3 + $0x34] sm:$0xf] }
 0x117   : > { %v1912_v62 = vor.u32 %v2039_v57, %v1909_v45  ;;  %v1947_v57 = vld [vmem:[%s3276_s3 + $0x80] sm:$0xf]  ;;  %v1884_v45 = vor.u32 %v2034_v34, %v1883_v14 }
 0x119   : > { %1183 = vmatpush.bf16.msra.mxu2 %v1912_v62  ;;  %1087 = vmatpush.bf16.msra.mxu0 %v1892_v24  ;;  %v2033_v62 = vld [vmem:[%s3276_s3 + $0x4] sm:$0xf] }
 0x11a   : > { %760 = vmax.xlane.f32.xlu2 %v759_v53  ;;  %757 = vmax.xlane.f32.xlu1 %v756_v63  ;;  %v1973_v53 = vld [vmem:[%s3276_s3 + $0xb8] sm:$0xf0]  ;;  %v765_v63 = vmax.f32 %v2960_v47, %v2962_v9 }
 0x11b   : > { %v1976_v54 = vor.u32 %v2055_v52, %v1973_v53  ;;  %v2050_v52 = vld [vmem:[%s3276_s3 + $0x84] sm:$0xf0]  ;;  %v1885_v53 = vld [vmem:[%s3276_s3 + $0x8] sm:$0xf0] }
 0x11d   : > { %1232 = vmatpush.bf16.msra.mxu3 %v1976_v54  ;;  %1184 = vmatpush.bf16.msra.mxu2 %v1904_v10  ;;  %v1888_v54 = vor.u32 %v2033_v62, %v1885_v53 }
 0x11e   : > { %1088 = vmatpush.bf16.msra.mxu0 %v1884_v45 }
 0x121   : > { %1233 = vmatpush.bf16.msra.mxu3 %v1968_v18  ;;  %1185 = vmatpush.bf16.msra.mxu2 %v1896_v49 }
 0x122   : > { %763 = vmax.xlane.f32.xlu1 %v762_v5  ;;  %v1964_v5 = vor.u32 %v2054_v2, %v1963_v59  ;;  %v1952_v59 = vor.u32 %v2049_v58, %v1949_v36 }
 0x124   : > { %1135 = vmatpush.bf16.msra.mxu1 %v1964_v5  ;;  %v568_v5 = vunpack.c.3.s8 %v2766_v44 }
 0x125   : > { %1234 = vmatpush.bf16.msra.mxu3 %v1960_v22  ;;  %1186 = vmatpush.bf16.msra.mxu2 %v1888_v54 }
 0x126   : > { %v599_v19 = vpack.c.b16 %v568_v5, %v567_v15 }
 0x128   : > { %1136 = vmatpush.bf16.msra.mxu1 %v1956_v23  ;;  %v600_v60 = vpack.c.b8 %v599_v19, %v599_v19 }
 0x129   : > { %1235 = vmatpush.bf16.msra.mxu3 %v1952_v59 }
 0x12a   : > { %766 = vmax.xlane.f32.xlu1 %v765_v63  ;;  %v1948_v63 = vor.u32 %v2050_v52, %v1947_v57  ;;  %vm616_vm15 = vnez %v600_v60 }
 0x12b   : > { %v632_v45 = vsel %vm616_vm15, 16843009, %v2391_v0 }
 0x12c   : > { %1137 = vmatpush.bf16.msra.mxu1 %v1948_v63  ;;  %v663_v36 = vunpack.c.0.s8 %v632_v45  ;;  %v664_v59 = vunpack.c.1.s8 %v632_v45 }
 0x12e   : > { %vm695_vm1 = vcmp.ne.s32.totalorder %v663_v36, 0  ;;  %vm696_vm2 = vcmp.ne.s32.totalorder %v664_v59, 0 }
 0x13a   : > { %v737_v20 = vpop.xlane.xlu1 %736 }
 0x13b   : > { %v781_v57 = vsub.f32 %v2658_v40, %v737_v20 }
 0x13c   : > { %v731_v1 = vpop.xlane.xlu2 %730 }
 0x13d   : > { %v777_v2 = vsub.f32 %v2666_v42, %v731_v1  ;;  %v778_v50 = vsub.f32 %v2672_v46, %v731_v1  ;;  %v563_v42 = vunpack.c.1.s8 %v2754_v35  ;;  %v564_v46 = vunpack.c.1.s8 %v2766_v44 }
 0x13e   : > { %v817_v40 = vmul.f32 1.442695, %v781_v57 }
 0x13f   : > { %v809_v16 = vmul.f32 1.442695, %v777_v2  ;;  %v811_v17 = vmul.f32 1.442695, %v778_v50  ;;  %v595_v32 = vpack.c.b16 %v564_v46, %v563_v42 }
 0x141   : > { %2127 = vpow2.f32 %v809_v16  ;;  %v596_v14 = vpack.c.b8 %v595_v32, %v595_v32 }
 0x142   : > { %2129 = vpow2.f32 %v811_v17  ;;  %v3101_v62 = vpop.xlane.xlu1 %742 }
 0x143   : > { %v734_v31 = vpop.xlane.xlu0 %733  ;;  %vm614_vm0 = vnez %v596_v14 }
 0x144   : > { %v740_v10 = vpop.xlane.xlu2 %739  ;;  %v779_v18 = vsub.f32 %v2694_v8, %v734_v31  ;;  %v780_v13 = vsub.f32 %v2698_v12, %v734_v31  ;;  %v565_v8 = vunpack.c.2.s8 %v2754_v35  ;;  %v566_v12 = vunpack.c.2.s8 %v2766_v44 }
 0x145   : > { %v783_v22 = vsub.f32 %v2690_v6, %v740_v10  ;;  %v784_v53 = vsub.f32 %v2692_v7, %v740_v10  ;;  %v782_v35 = vsub.f32 %v2662_v41, %v737_v20  ;;  %v630_v10 = vsel %vm614_vm0, 16843009, %v2391_v0 }
 0x146   : > { %v813_v24 = vmul.f32 1.442695, %v779_v18  ;;  %v815_v23 = vmul.f32 1.442695, %v780_v13  ;;  %v597_v54 = vpack.c.b16 %v566_v12, %v565_v8  ;;  %v659_v13 = vunpack.c.0.s8 %v630_v10 }
 0x147   : > { %v2128_v49 = vpop.eup %2127  ;;  %v821_v58 = vmul.f32 1.442695, %v783_v22  ;;  %v823_v7 = vmul.f32 1.442695, %v784_v53  ;;  %v819_v31 = vmul.f32 1.442695, %v782_v35  ;;  %v660_v19 = vunpack.c.1.s8 %v630_v10 }
 0x148   : > { %2131 = vpow2.f32 %v813_v24  ;;  %v2130_v51 = vpop.eup %2129  ;;  %v598_v50 = vpack.c.b8 %v597_v54, %v597_v54  ;;  %vm691_vm4 = vcmp.ne.s32.totalorder %v659_v13, 0 }
 0x149   : > { %2133 = vpow2.f32 %v815_v23  ;;  %vm692_vm5 = vcmp.ne.s32.totalorder %v660_v19, 0 }
 0x14a   : > { %2135 = vpow2.f32 %v821_v58  ;;  %vm615_vm3 = vnez %v598_v50 }
 0x14b   : > { %v746_v15 = vpop.xlane.xlu0 %745  ;;  %2137 = vpow2.f32 %v817_v40  ;;  %v631_v12 = vsel %vm615_vm3, 16843009, %v2391_v0 }
 0x14c   : > { %v3094_v61 = vpop.xlane.xlu2 %748  ;;  %2139 = vpow2.f32 %v823_v7  ;;  %v787_v57 = vsub.f32 %v2704_v27, %v746_v15  ;;  %v788_v45 = vsub.f32 %v2706_v28, %v746_v15  ;;  %v662_v59 = vunpack.c.1.s8 %v631_v12 }
 0x14d   : > { %2141 = vpow2.f32 %v819_v31  ;;  %v785_v27 = vsub.f32 %v2647_v25, %v3101_v62 }
 0x14e   : > { %v2132_v34 = vpop.eup %2131  ;;  %vm694_vm7 = vcmp.ne.s32.totalorder %v662_v59, 0 }
 0x14f   : > { %v2134_v52 = vpop.eup %2133  ;;  %v873_v63 = vpack.c.bf16 %v2132_v34, %v2128_v49  ;;  %v825_v7 = vmul.f32 1.442695, %v785_v27 }
 0x150   : > { %v874_v44 = vpack.c.bf16 %v2134_v52, %v2130_v51  ;;  %v2136_v8 = vpop.eup %2135 }
 0x151   : > { %1089 = vmatmul.bf16.vlgmr.msra.gmra.mxu0 %v873_v63  ;;  %1187 = vmatmul.bf16.vlgmr.msra.gmra.mxu2 %v873_v63  ;;  %v2138_v49 = vpop.eup %2137 }
 0x152   : > { %1138 = vmatmul.bf16.vlgmr.msra.gmra.mxu1 %v874_v44  ;;  %1236 = vmatmul.bf16.vlgmr.msra.gmra.mxu3 %v874_v44  ;;  %v2140_v34 = vpop.eup %2139  ;;  %v875_v63 = vpack.c.bf16 %v2136_v8, %v2138_v49  ;;  %v661_v44 = vunpack.c.0.s8 %v631_v12 }
 0x153   : > { %v2142_v0 = vpop.eup %2141 }
 0x154   : > { %v410_v6 = vpop.permute.xlu2 %409  ;;  %v876_v28 = vpack.c.bf16 %v2140_v34, %v2142_v0  ;;  %vm693_vm6 = vcmp.ne.s32.totalorder %v661_v44, 0 }
 0x155   : > { %v447_v1 = vadd.f32 %v2600_v38, %v410_v6  ;;  %v448_v2 = vadd.f32 %v2602_v39, %v410_v6 }
 0x157   : > { %v479_v5 = vmul.f32 0.2, %v447_v1  ;;  %v480_v41 = vmul.f32 0.2, %v448_v2 }
 0x159   : > { %v511_v16 = vmax.f32 %v447_v1, %v479_v5  ;;  %v512_v17 = vmax.f32 %v448_v2, %v480_v41  ;;  %v831_v2 = vmul.f32 1.442695, %v788_v45 }
 0x15a   : > { %v400_v18 = vpop.permute.xlu1 %399 }
 0x15b   : > { %v443_v20 = vadd.f32 %v2600_v38, %v400_v18  ;;  %v444_v24 = vadd.f32 %v2602_v39, %v400_v18  ;;  %v3110_v23 = vsel %vm695_vm1, %v511_v16, -1e+09  ;;  %v3112_v42 = vsel %vm696_vm2, %v512_v17, -1e+09 }
 0x15c   : > { %v774_v46 = vmax.f32 %v3110_v23, %v3112_v42  ;;  %v789_v17 = vsub.f32 %v2708_v29, %v3094_v61  ;;  %v790_v18 = vsub.f32 %v2710_v30, %v3094_v61 }
 0x15d   : > { %v475_v60 = vmul.f32 0.2, %v443_v20  ;;  %v476_v32 = vmul.f32 0.2, %v444_v24 }
 0x15e   : > { %775 = vmax.xlane.f32.xlu0 %v774_v46  ;;  %v405_v14 = vpop.permute.xlu0 %404  ;;  %v833_v13 = vmul.f32 1.442695, %v789_v17  ;;  %v835_v19 = vmul.f32 1.442695, %v790_v18 }
 0x15f   : > { %v507_v51 = vmax.f32 %v443_v20, %v475_v60  ;;  %v508_v22 = vmax.f32 %v444_v24, %v476_v32  ;;  %v445_v52 = vadd.f32 %v2600_v38, %v405_v14  ;;  %v446_v53 = vadd.f32 %v2602_v39, %v405_v14 }
 0x160   : > { %v786_v38 = vsub.f32 %v2651_v26, %v3101_v62  ;;  %v829_v39 = vmul.f32 1.442695, %v787_v57 }
 0x161   : > { %v3121_v54 = vsel %vm691_vm4, %v507_v51, -1e+09  ;;  %v3123_v35 = vsel %vm692_vm5, %v508_v22, -1e+09  ;;  %v477_v58 = vmul.f32 0.2, %v445_v52  ;;  %1094 = vmatmul.bf16.gmra.mxu0 %v875_v63  ;;  %1192 = vmatmul.bf16.gmra.mxu2 %v875_v63 }
 0x162   : > { %v478_v6 = vmul.f32 0.2, %v446_v53  ;;  %v768_v36 = vmax.f32 %v3121_v54, %v3123_v35  ;;  %1143 = vmatmul.bf16.gmra.mxu1 %v876_v28  ;;  %1241 = vmatmul.bf16.gmra.mxu3 %v876_v28  ;;  %v827_v50 = vmul.f32 1.442695, %v786_v38  ;;  %2143 = vpow2.f32 %v829_v39 }
 0x163   : > { %v509_v40 = vmax.f32 %v445_v52, %v477_v58  ;;  %2145 = vpow2.f32 %v831_v2 }
 0x164   : > { %v510_v1 = vmax.f32 %v446_v53, %v478_v6  ;;  %769 = vmax.xlane.f32.xlu1 %v768_v36  ;;  %2147 = vpow2.f32 %v825_v7 }
 0x165   : > { %v3131_v15 = vsel %vm693_vm6, %v509_v40, -1e+09  ;;  %2149 = vpow2.f32 %v827_v50 }
 0x166   : > { %v3133_v25 = vsel %vm694_vm7, %v510_v1, -1e+09  ;;  %2151 = vpow2.f32 %v833_v13 }
 0x167   : > { %v771_v26 = vmax.f32 %v3131_v15, %v3133_v25  ;;  %2153 = vpow2.f32 %v835_v19 }
 0x168   : > { %v2144_v62 = vpop.eup %2143 }
 0x169   : > { %v2146_v5 = vpop.eup %2145 }
 0x16a   : > { %v2148_v41 = vpop.eup %2147 }
 0x16b   : > { %v2150_v10 = vpop.eup %2149  ;;  %v877_v31 = vpack.c.bf16 %v2144_v62, %v2148_v41 }
 0x16c   : > { %772 = vmax.xlane.f32.xlu1 %v771_v26  ;;  %v878_v16 = vpack.c.bf16 %v2146_v5, %v2150_v10  ;;  %v2152_v12 = vpop.eup %2151 }
 0x16d   : > { %v2154_v49 = vpop.eup %2153 }
 0x171   : > { %1099 = vmatmul.bf16.gmra.mxu0 %v877_v31  ;;  %1197 = vmatmul.bf16.gmra.mxu2 %v877_v31 }
 0x172   : > { %1148 = vmatmul.bf16.gmra.mxu1 %v878_v16  ;;  %1246 = vmatmul.bf16.gmra.mxu3 %v878_v16 }
 0x185   : > { %v752_v20 = vpop.xlane.xlu1 %751 }
 0x186   : > { %v791_v24 = vsub.f32 %v2789_v55, %v752_v20  ;;  %v792_v46 = vsub.f32 %v2793_v56, %v752_v20 }
 0x188   : > { %v837_v60 = vmul.f32 1.442695, %v791_v24  ;;  %v839_v32 = vmul.f32 1.442695, %v792_v46 }
 0x189   : > { %v755_v29 = vpop.xlane.xlu0 %754 }
 0x18a   : > { %2155 = vpow2.f32 %v837_v60  ;;  %v793_v55 = vsub.f32 %v2915_v37, %v755_v29  ;;  %v794_v34 = vsub.f32 %v2919_v43, %v755_v29 }
 0x18b   : > { %2157 = vpow2.f32 %v839_v32 }
 0x18c   : > { %v841_v52 = vmul.f32 1.442695, %v793_v55  ;;  %v843_v53 = vmul.f32 1.442695, %v794_v34 }
 0x18d   : > { %v758_v8 = vpop.xlane.xlu1 %757  ;;  %v761_v44 = vpop.xlane.xlu2 %760 }
 0x18e   : > { %v795_v30 = vsub.f32 %v2941_v11, %v758_v8  ;;  %v796_v22 = vsub.f32 %v2945_v21, %v758_v8  ;;  %v797_v36 = vsub.f32 %v2928_v33, %v761_v44  ;;  %v798_v27 = vsub.f32 %v2935_v48, %v761_v44 }
 0x190   : > { %v2156_v51 = vpop.eup %2155  ;;  %v845_v57 = vmul.f32 1.442695, %v795_v30  ;;  %v847_v45 = vmul.f32 1.442695, %v796_v22  ;;  %v849_v39 = vmul.f32 1.442695, %v797_v36 }
 0x191   : > { %v2158_v61 = vpop.eup %2157  ;;  %v879_v14 = vpack.c.bf16 %v2156_v51, %v2152_v12  ;;  %v851_v40 = vmul.f32 1.442695, %v798_v27 }
 0x192   : > { %v880_v56 = vpack.c.bf16 %v2158_v61, %v2154_v49  ;;  %2159 = vpow2.f32 %v845_v57 }
 0x193   : > { %1104 = vmatmul.bf16.gmra.mxu0 %v879_v14  ;;  %1202 = vmatmul.bf16.gmra.mxu2 %v879_v14  ;;  %2161 = vpow2.f32 %v847_v45 }
 0x194   : > { %1153 = vmatmul.bf16.gmra.mxu1 %v880_v56  ;;  %1251 = vmatmul.bf16.gmra.mxu3 %v880_v56  ;;  %2163 = vpow2.f32 %v841_v52 }
 0x195   : > { %2165 = vpow2.f32 %v843_v53  ;;  %v764_v11 = vpop.xlane.xlu1 %763 }
 0x196   : > { %v799_v0 = vsub.f32 %v2954_v3, %v764_v11  ;;  %v800_v58 = vsub.f32 %v2956_v4, %v764_v11 }
 0x198   : > { %v2160_v21 = vpop.eup %2159  ;;  %v853_v28 = vmul.f32 1.442695, %v799_v0  ;;  %v855_v38 = vmul.f32 1.442695, %v800_v58 }
 0x199   : > { %v2162_v63 = vpop.eup %2161 }
 0x19a   : > { %v2164_v37 = vpop.eup %2163  ;;  %2167 = vpow2.f32 %v853_v28 }
 0x19b   : > { %v2166_v43 = vpop.eup %2165  ;;  %v881_v6 = vpack.c.bf16 %v2160_v21, %v2164_v37  ;;  %2169 = vpow2.f32 %v855_v38 }
 0x19c   : > { %v882_v59 = vpack.c.bf16 %v2162_v63, %v2166_v43  ;;  %2171 = vpow2.f32 %v849_v39 }
 0x19d   : > { %2173 = vpow2.f32 %v851_v40  ;;  %v767_v48 = vpop.xlane.xlu1 %766 }
 0x19e   : > { %v801_v50 = vsub.f32 %v2960_v47, %v767_v48  ;;  %v802_v26 = vsub.f32 %v2962_v9, %v767_v48 }
 0x1a0   : > { %v2168_v3 = vpop.eup %2167  ;;  %v857_v5 = vmul.f32 1.442695, %v801_v50  ;;  %v859_v10 = vmul.f32 1.442695, %v802_v26 }
 0x1a1   : > { %v2170_v4 = vpop.eup %2169 }
 0x1a2   : > { %v2172_v1 = vpop.eup %2171 }
 0x1a3   : > { %1109 = vmatmul.bf16.gmra.mxu0 %v881_v6  ;;  %1207 = vmatmul.bf16.gmra.mxu2 %v881_v6  ;;  %v2174_v2 = vpop.eup %2173  ;;  %v883_v33 = vpack.c.bf16 %v2168_v3, %v2172_v1 }
 0x1a4   : > { %1158 = vmatmul.bf16.gmra.mxu1 %v882_v59  ;;  %1256 = vmatmul.bf16.gmra.mxu3 %v882_v59  ;;  %v884_v7 = vpack.c.bf16 %v2170_v4, %v2174_v2 }
 0x1b3   : > { %1114 = vmatmul.bf16.gmra.mxu0 %v883_v33  ;;  %1212 = vmatmul.bf16.gmra.mxu2 %v883_v33 }
 0x1b4   : > { %1163 = vmatmul.bf16.gmra.mxu1 %v884_v7  ;;  %1261 = vmatmul.bf16.gmra.mxu3 %v884_v7 }
 0x1d1   : > { %v776_v32 = vpop.xlane.xlu0 %775 }
 0x1d2   : > { %v807_v51 = vsub.f32 %v3110_v23, %v776_v32  ;;  %v808_v34 = vsub.f32 %v3112_v42, %v776_v32 }
 0x1d4   : > { %v1188_v62 = vpop.f32.mrf.mxu2  ;;  %v869_v21 = vmul.f32 1.442695, %v807_v51  ;;  %v871_v42 = vmul.f32 1.442695, %v808_v34 }
 0x1d5   : > { %v1237_v41 = vpop.f32.mrf.mxu3 }
 0x1d6   : > { %v1238_v31 = vadd.f32 %v1237_v41, %v1188_v62 }
 0x1d7   : > { %v770_v16 = vpop.xlane.xlu1 %769 }
 0x1d8   : > { %v803_v17 = vsub.f32 %v3121_v54, %v770_v16  ;;  %v804_v18 = vsub.f32 %v3123_v35, %v770_v16  ;;  %2175 = vrcp.f32 %v1238_v31  ;;  %v1288_v22 = vand.u32 2147483648, %v1238_v31 }
 0x1d9   : > { %2177 = vpow2.f32 %v857_v5  ;;  %v1286_v56 = vand.u32 2147483647, %v1238_v31  ;;  %vm1282_vm9 = vweird.f32 %v1238_v31 }
 0x1da   : > { %v861_v13 = vmul.f32 1.442695, %v803_v17  ;;  %v863_v19 = vmul.f32 1.442695, %v804_v18  ;;  %2179 = vpow2.f32 %v859_v10  ;;  %v1289_v11 = vor.u32 1.1754944e-38, %v1288_v22 }
 0x1db   : > { %vm1287_vm11 = vcmp.eq.f32.partialorder %v1286_v56, 8.507059e+37 }
 0x1dc   : > { %2181 = vpow2.f32 %v861_v13  ;;  %v1190_v47 = vpop.f32.mrf.mxu2 }
 0x1dd   : > { %2183 = vpow2.f32 %v863_v19  ;;  %v1239_v20 = vpop.f32.mrf.mxu3 }
 0x1de   : > { %v2176_v9 = vpop.eup %2175  ;;  %v1240_v24 = vadd.f32 %v1239_v20, %v1190_v47 }
 0x1df   : > { %v773_v46 = vpop.xlane.xlu1 %772  ;;  %v2178_v60 = vpop.eup %2177  ;;  %v1278_v8 = vmul.f32 %v2176_v9, %v1238_v31  ;;  %vm1283_vm8 = vweird.f32 %v2176_v9 }
 0x1e0   : > { %v2180_v12 = vpop.eup %2179  ;;  %2185 = vrcp.f32 %v1240_v24  ;;  %v805_v35 = vsub.f32 %v3131_v15, %v773_v46  ;;  %v806_v30 = vsub.f32 %v3133_v25, %v773_v46  ;;  %vm1284_vm10 = vmor %vm1282_vm9, %vm1283_vm8  ;;  %v1302_v43 = vand.u32 2147483648, %v1240_v24 }
 0x1e1   : > { %v1279_v49 = vsub.f32 1.0, %v1278_v8  ;;  %v1300_v6 = vand.u32 2147483647, %v1240_v24  ;;  %vm1296_vm13 = vweird.f32 %v1240_v24 }
 0x1e2   : > { %v2182_v54 = vpop.eup %2181  ;;  %v865_v45 = vmul.f32 1.442695, %v805_v35  ;;  %v867_v53 = vmul.f32 1.442695, %v806_v30  ;;  %v1303_v39 = vor.u32 1.1754944e-38, %v1302_v43 }
 0x1e3   : > { %v2184_v29 = vpop.eup %2183  ;;  %v885_v61 = vpack.c.bf16 %v2182_v54, %v2178_v60  ;;  %v1280_v55 = vmul.f32 %v2176_v9, %v1279_v49  ;;  %vm1301_vm15 = vcmp.eq.f32.partialorder %v1300_v6, 8.507059e+37 }
 0x1e4   : > { %v886_v14 = vpack.c.bf16 %v2184_v29, %v2180_v12  ;;  %v1193_v57 = vpop.f32.mrf.mxu2 }
 0x1e5   : > { %1119 = vmatmul.bf16.gmra.mxu0 %v885_v61  ;;  %1217 = vmatmul.bf16.gmra.mxu2 %v885_v61  ;;  %v1242_v52 = vpop.f32.mrf.mxu3  ;;  %v1281_v15 = vadd.f32 %v2176_v9, %v1280_v55 }
 0x1e6   : > { %1168 = vmatmul.bf16.gmra.mxu1 %v886_v14  ;;  %1266 = vmatmul.bf16.gmra.mxu3 %v886_v14  ;;  %v2186_v23 = vpop.eup %2185  ;;  %v1243_v25 = vadd.f32 %v1242_v52, %v1193_v57 }
 0x1e7   : > { %v1285_v63 = vsel %vm1284_vm10, %v2176_v9, %v1281_v15  ;;  %v1292_v44 = vmul.f32 %v2186_v23, %v1240_v24  ;;  %vm1297_vm12 = vweird.f32 %v2186_v23 }
 0x1e8   : > { %2187 = vrcp.f32 %v1243_v25  ;;  %v1290_v37 = vsel %vm1287_vm11, %v1289_v11, %v1285_v63  ;;  %vm1298_vm14 = vmor %vm1296_vm13, %vm1297_vm12  ;;  %v1316_v26 = vand.u32 2147483648, %v1243_v25  ;;  %v1314_v41 = vand.u32 2147483647, %v1243_v25 }
 0x1e9   : > { %2189 = vpow2.f32 %v865_v45  ;;  %1503 = vperm.xlu1 %2125, %v1290_v37   ;;  %v1293_v0 = vsub.f32 1.0, %v1292_v44  ;;  %vm1310_vm1 = vweird.f32 %v1243_v25 }
 0x1ea   : > { %2191 = vpow2.f32 %v867_v53  ;;  %v1317_v13 = vor.u32 1.1754944e-38, %v1316_v26  ;;  %vm1315_vm3 = vcmp.eq.f32.partialorder %v1314_v41, 8.507059e+37 }
 0x1eb   : > { %2193 = vpow2.f32 %v869_v21  ;;  %v1294_v58 = vmul.f32 %v2186_v23, %v1293_v0 }
 0x1ec   : > { %2195 = vpow2.f32 %v871_v42  ;;  %v1195_v36 = vpop.f32.mrf.mxu2 }
 0x1ed   : > { %v1244_v59 = vpop.f32.mrf.mxu3  ;;  %v1295_v27 = vadd.f32 %v2186_v23, %v1294_v58 }
 0x1ee   : > { %v2188_v28 = vpop.eup %2187  ;;  %v1245_v38 = vadd.f32 %v1244_v59, %v1195_v36 }
 0x1ef   : > { %v2190_v40 = vpop.eup %2189  ;;  %v1299_v3 = vsel %vm1298_vm14, %v2186_v23, %v1295_v27  ;;  %v1306_v4 = vmul.f32 %v2188_v28, %v1243_v25  ;;  %vm1311_vm0 = vweird.f32 %v2188_v28 }
 0x1f0   : > { %v2192_v1 = vpop.eup %2191  ;;  %2197 = vrcp.f32 %v1245_v38  ;;  %v1304_v2 = vsel %vm1301_vm15, %v1303_v39, %v1299_v3  ;;  %vm1312_vm2 = vmor %vm1310_vm1, %vm1311_vm0  ;;  %v1330_v24 = vand.u32 2147483648, %v1245_v38  ;;  %v1328_v60 = vand.u32 2147483647, %v1245_v38 }
 0x1f1   : > { %v2194_v33 = vpop.eup %2193  ;;  %1508 = vperm.xlu0 %2124, %v1304_v2   ;;  %v1307_v7 = vsub.f32 1.0, %v1306_v4  ;;  %vm1324_vm5 = vweird.f32 %v1245_v38 }
 0x1f2   : > { %v2196_v48 = vpop.eup %2195  ;;  %v887_v50 = vpack.c.bf16 %v2194_v33, %v2190_v40  ;;  %v1331_v49 = vor.u32 1.1754944e-38, %v1330_v24  ;;  %vm1329_vm7 = vcmp.eq.f32.partialorder %v1328_v60, 8.507059e+37 }
 0x1f3   : > { %v888_v62 = vpack.c.bf16 %v2196_v48, %v2192_v1  ;;  %v1308_v5 = vmul.f32 %v2188_v28, %v1307_v7 }
 0x1f4   : > { %v1198_v10 = vpop.f32.mrf.mxu2 }
 0x1f5   : > { %1124 = vmatmul.bf16.gmra.mxu0 %v887_v50  ;;  %1222 = vmatmul.bf16.gmra.mxu2 %v887_v50  ;;  %v1247_v31 = vpop.f32.mrf.mxu3  ;;  %v1309_v16 = vadd.f32 %v2188_v28, %v1308_v5 }
 0x1f6   : > { %1173 = vmatmul.bf16.gmra.mxu1 %v888_v62  ;;  %1271 = vmatmul.bf16.gmra.mxu3 %v888_v62  ;;  %v2198_v17 = vpop.eup %2197  ;;  %v1248_v18 = vadd.f32 %v1247_v31, %v1198_v10 }
 0x1f7   : > { %v1313_v19 = vsel %vm1312_vm2, %v2188_v28, %v1309_v16  ;;  %v1320_v47 = vmul.f32 %v2198_v17, %v1245_v38  ;;  %vm1325_vm4 = vweird.f32 %v2198_v17 }
 0x1f8   : > { %2199 = vrcp.f32 %v1248_v18  ;;  %v1318_v20 = vsel %vm1315_vm3, %v1317_v13, %v1313_v19  ;;  %vm1326_vm6 = vmor %vm1324_vm5, %vm1325_vm4  ;;  %v1344_v22 = vand.u32 2147483648, %v1248_v18  ;;  %v1342_v55 = vand.u32 2147483647, %v1248_v18 }
 0x1f9   : > { %1513 = vperm.xlu2 %2126, %v1318_v20   ;;  %v1321_v9 = vsub.f32 1.0, %v1320_v47  ;;  %vm1338_vm9 = vweird.f32 %v1248_v18 }
 0x1fa   : > { %v1345_v57 = vor.u32 1.1754944e-38, %v1344_v22  ;;  %vm1343_vm11 = vcmp.eq.f32.partialorder %v1342_v55, 8.507059e+37  ;;  %v1090_v55 = vpop.f32.mrf.mxu0 }
 0x1fb   : > { %v1322_v46 = vmul.f32 %v2198_v17, %v1321_v9 }
 0x1fc   : > { %v1200_v32 = vpop.f32.mrf.mxu2 }
 0x1fd   : > { %v1249_v8 = vpop.f32.mrf.mxu3  ;;  %v1323_v12 = vadd.f32 %v2198_v17, %v1322_v46 }
 0x1fe   : > { %v2200_v54 = vpop.eup %2199  ;;  %v1250_v35 = vadd.f32 %v1249_v8, %v1200_v32 }
 0x1ff   : > { %v1327_v29 = vsel %vm1326_vm6, %v2198_v17, %v1323_v12  ;;  %v1334_v51 = vmul.f32 %v2200_v54, %v1248_v18  ;;  %vm1339_vm8 = vweird.f32 %v2200_v54 }
 0x200   : > { %2201 = vrcp.f32 %v1250_v35  ;;  %v1332_v30 = vsel %vm1329_vm7, %v1331_v49, %v1327_v29  ;;  %vm1340_vm10 = vmor %vm1338_vm9, %vm1339_vm8  ;;  %v1358_v53 = vand.u32 2147483648, %v1250_v35  ;;  %v1356_v11 = vand.u32 2147483647, %v1250_v35 }
 0x201   : > { %1518 = vperm.xlu0 %2124, %v1332_v30   ;;  %v1335_v61 = vsub.f32 1.0, %v1334_v51  ;;  %vm1352_vm13 = vweird.f32 %v1250_v35 }
 0x202   : > { %v1359_v63 = vor.u32 1.1754944e-38, %v1358_v53  ;;  %vm1357_vm15 = vcmp.eq.f32.partialorder %v1356_v11, 8.507059e+37 }
 0x203   : > { %v1336_v14 = vmul.f32 %v2200_v54, %v1335_v61 }
 0x205   : > { %v1337_v56 = vadd.f32 %v2200_v54, %v1336_v14 }
 0x206   : > { %v2202_v34 = vpop.eup %2201 }
 0x207   : > { %v1341_v45 = vsel %vm1340_vm10, %v2200_v54, %v1337_v56  ;;  %v1348_v52 = vmul.f32 %v2202_v34, %v1250_v35  ;;  %vm1353_vm12 = vweird.f32 %v2202_v34 }
 0x208   : > { %v1346_v15 = vsel %vm1343_vm11, %v1345_v57, %v1341_v45  ;;  %vm1354_vm14 = vmor %vm1352_vm13, %vm1353_vm12  ;;  %v1139_v57 = vpop.f32.mrf.mxu1 }
 0x209   : > { %1523 = vperm.xlu1 %2125, %v1346_v15   ;;  %v1349_v23 = vsub.f32 1.0, %v1348_v52 }
 0x20b   : > { %v1350_v25 = vmul.f32 %v2202_v34, %v1349_v23 }
 0x20d   : > { %v1351_v21 = vadd.f32 %v2202_v34, %v1350_v25 }
 0x20f   : > { %v1355_v44 = vsel %vm1354_vm14, %v2202_v34, %v1351_v21 }
 0x210   : > { %v1360_v42 = vsel %vm1357_vm15, %v1359_v63, %v1355_v44 }
 0x211   : > { %1528 = vperm.xlu0 %2124, %v1360_v42  }
 0x216   : > { %v1203_v37 = vpop.f32.mrf.mxu2 }
 0x217   : > { %v1252_v0 = vpop.f32.mrf.mxu3 }
 0x218   : > { %v1253_v43 = vadd.f32 %v1252_v0, %v1203_v37 }
 0x21a   : > { %2203 = vrcp.f32 %v1253_v43  ;;  %v1372_v38 = vand.u32 2147483648, %v1253_v43  ;;  %v1370_v40 = vand.u32 2147483647, %v1253_v43  ;;  %vm1366_vm1 = vweird.f32 %v1253_v43 }
 0x21c   : > { %v1373_v7 = vor.u32 1.1754944e-38, %v1372_v38  ;;  %vm1371_vm3 = vcmp.eq.f32.partialorder %v1370_v40, 8.507059e+37 }
 0x21e   : > { %v1205_v58 = vpop.f32.mrf.mxu2 }
 0x21f   : > { %v1254_v6 = vpop.f32.mrf.mxu3 }
 0x220   : > { %v2204_v36 = vpop.eup %2203  ;;  %v1255_v59 = vadd.f32 %v1254_v6, %v1205_v58  ;;  %v1092_v6 = vpop.f32.mrf.mxu0 }
 0x221   : > { %v1362_v27 = vmul.f32 %v2204_v36, %v1253_v43  ;;  %vm1367_vm0 = vweird.f32 %v2204_v36 }
 0x222   : > { %2205 = vrcp.f32 %v1255_v59  ;;  %vm1368_vm2 = vmor %vm1366_vm1, %vm1367_vm0  ;;  %v1386_v5 = vand.u32 2147483648, %v1255_v59  ;;  %v1384_v10 = vand.u32 2147483647, %v1255_v59  ;;  %vm1380_vm5 = vweird.f32 %v1255_v59 }
 0x223   : > { %v1363_v28 = vsub.f32 1.0, %v1362_v27 }
 0x224   : > { %v1387_v19 = vor.u32 1.1754944e-38, %v1386_v5  ;;  %vm1385_vm7 = vcmp.eq.f32.partialorder %v1384_v10, 8.507059e+37 }
 0x225   : > { %v1364_v39 = vmul.f32 %v2204_v36, %v1363_v28 }
 0x226   : > { %v1208_v3 = vpop.f32.mrf.mxu2 }
 0x227   : > { %v1257_v4 = vpop.f32.mrf.mxu3  ;;  %v1365_v1 = vadd.f32 %v2204_v36, %v1364_v39 }
 0x228   : > { %v2206_v2 = vpop.eup %2205  ;;  %v1258_v33 = vadd.f32 %v1257_v4, %v1208_v3 }
 0x229   : > { %v1369_v48 = vsel %vm1368_vm2, %v2204_v36, %v1365_v1  ;;  %v1376_v50 = vmul.f32 %v2206_v2, %v1255_v59  ;;  %vm1381_vm4 = vweird.f32 %v2206_v2  ;;  %v1141_v36 = vpop.f32.mrf.mxu1 }
 0x22a   : > { %2207 = vrcp.f32 %v1258_v33  ;;  %v1374_v26 = vsel %vm1371_vm3, %v1373_v7, %v1369_v48  ;;  %vm1382_vm6 = vmor %vm1380_vm5, %vm1381_vm4  ;;  %v1400_v46 = vand.u32 2147483648, %v1258_v33  ;;  %v1398_v32 = vand.u32 2147483647, %v1258_v33  ;;  %v1095_v7 = vpop.f32.mrf.mxu0 }
 0x22b   : > { %1533 = vperm.xlu2 %2126, %v1374_v26   ;;  %v1377_v62 = vsub.f32 1.0, %v1376_v50  ;;  %vm1394_vm9 = vweird.f32 %v1258_v33 }
 0x22c   : > { %v1401_v29 = vor.u32 1.1754944e-38, %v1400_v46  ;;  %vm1399_vm11 = vcmp.eq.f32.partialorder %v1398_v32, 8.507059e+37 }
 0x22d   : > { %v1378_v41 = vmul.f32 %v2206_v2, %v1377_v62  ;;  %v1599_v62 = vld [vmem:[%s2554_s16 + $0x10] sm:$0xff] }
 0x22e   : > { %v1210_v31 = vpop.f32.mrf.mxu2 }
 0x22f   : > { %v1259_v16 = vpop.f32.mrf.mxu3  ;;  %v1379_v17 = vadd.f32 %v2206_v2, %v1378_v41 }
 0x230   : > { %v2208_v18 = vpop.eup %2207  ;;  %v1260_v13 = vadd.f32 %v1259_v16, %v1210_v31  ;;  %v1140_v16 = vadd.f32 %v1139_v57, %v1090_v55 }
 0x231   : > { %v1383_v47 = vsel %vm1382_vm6, %v2206_v2, %v1379_v17  ;;  %v1390_v20 = vmul.f32 %v2208_v18, %v1258_v33  ;;  %vm1395_vm8 = vweird.f32 %v2208_v18  ;;  %v1144_v48 = vpop.f32.mrf.mxu1 }
 0x232   : > { %2209 = vrcp.f32 %v1260_v13  ;;  %v1388_v9 = vsel %vm1385_vm7, %v1387_v19, %v1383_v47  ;;  %vm1396_vm10 = vmor %vm1394_vm9, %vm1395_vm8  ;;  %v1414_v14 = vand.u32 2147483648, %v1260_v13  ;;  %v1412_v34 = vand.u32 2147483647, %v1260_v13 }
 0x233   : > { %1538 = vperm.xlu1 %2125, %v1388_v9   ;;  %v1391_v24 = vsub.f32 1.0, %v1390_v20  ;;  %vm1408_vm13 = vweird.f32 %v1260_v13  ;;  %v1145_v26 = vadd.f32 %v1144_v48, %v1095_v7 }
 0x234   : > { %v1415_v25 = vor.u32 1.1754944e-38, %v1414_v14  ;;  %vm1413_vm15 = vcmp.eq.f32.partialorder %v1412_v34, 8.507059e+37 }
 0x235   : > { %v1392_v60 = vmul.f32 %v2208_v18, %v1391_v24 }
 0x236   : > { %v1213_v8 = vpop.f32.mrf.mxu2 }
 0x237   : > { %v1262_v12 = vpop.f32.mrf.mxu3  ;;  %v1393_v54 = vadd.f32 %v2208_v18, %v1392_v60  ;;  %v1142_v60 = vadd.f32 %v1141_v36, %v1092_v6 }
 0x238   : > { %v2210_v35 = vpop.eup %2209  ;;  %v1263_v49 = vadd.f32 %v1262_v12, %v1213_v8  ;;  %v1598_v12 = vld [vmem:[%s2554_s16 + $0x8] sm:$0xff] }
 0x239   : > { %v1397_v51 = vsel %vm1396_vm10, %v2208_v18, %v1393_v54  ;;  %v1404_v30 = vmul.f32 %v2210_v35, %v1260_v13  ;;  %vm1409_vm12 = vweird.f32 %v2210_v35  ;;  %v1097_v18 = vpop.f32.mrf.mxu0  ;;  %v1597_v13 = vld [vmem:[%s2554_s16] sm:$0xff]  ;;  %v1146_v47 = vpop.f32.mrf.mxu1 }
 0x23a   : > { %2211 = vrcp.f32 %v1263_v49  ;;  %v1402_v61 = vsel %vm1399_vm11, %v1401_v29, %v1397_v51  ;;  %vm1410_vm14 = vmor %vm1408_vm13, %vm1409_vm12  ;;  %v1428_v42 = vand.u32 2147483648, %v1263_v49  ;;  %v1426_v0 = vand.u32 2147483647, %v1263_v49 }
 0x23b   : > { %1543 = vperm.xlu0 %2124, %v1402_v61   ;;  %v1405_v22 = vsub.f32 1.0, %v1404_v30  ;;  %vm1422_vm1 = vweird.f32 %v1263_v49 }
 0x23c   : > { %v1429_v59 = vor.u32 1.1754944e-38, %v1428_v42  ;;  %vm1427_vm3 = vcmp.eq.f32.partialorder %v1426_v0, 8.507059e+37 }
 0x23d   : > { %v1406_v56 = vmul.f32 %v2210_v35, %v1405_v22 }
 0x23e   : > { %v1215_v45 = vpop.f32.mrf.mxu2 }
 0x23f   : > { %v1264_v52 = vpop.f32.mrf.mxu3  ;;  %v1407_v15 = vadd.f32 %v2210_v35, %v1406_v56 }
 0x240   : > { %v2212_v23 = vpop.eup %2211  ;;  %v1265_v53 = vadd.f32 %v1264_v52, %v1215_v45 }
 0x241   : > { %v1411_v11 = vsel %vm1410_vm14, %v2210_v35, %v1407_v15  ;;  %v1418_v21 = vmul.f32 %v2212_v23, %v1263_v49  ;;  %vm1423_vm0 = vweird.f32 %v2212_v23  ;;  %v1100_v49 = vpop.f32.mrf.mxu0  ;;  %v1149_v51 = vpop.f32.mrf.mxu1 }
 0x242   : > { %2213 = vrcp.f32 %v1265_v53  ;;  %v1416_v63 = vsel %vm1413_vm15, %v1415_v25, %v1411_v11  ;;  %vm1424_vm2 = vmor %vm1422_vm1, %vm1423_vm0  ;;  %v1442_v40 = vand.u32 2147483648, %v1265_v53  ;;  %v1440_v4 = vand.u32 2147483647, %v1265_v53 }
 0x243   : > { %1548 = vperm.xlu2 %2126, %v1416_v63   ;;  %v1419_v44 = vsub.f32 1.0, %v1418_v21  ;;  %vm1436_vm5 = vweird.f32 %v1265_v53  ;;  %v1147_v63 = vadd.f32 %v1146_v47, %v1097_v18 }
 0x244   : > { %v1443_v2 = vor.u32 1.1754944e-38, %v1442_v40  ;;  %vm1441_vm7 = vcmp.eq.f32.partialorder %v1440_v4, 8.507059e+37 }
 0x245   : > { %v1420_v37 = vmul.f32 %v2212_v23, %v1419_v44 }
 0x247   : > { %v1421_v43 = vadd.f32 %v2212_v23, %v1420_v37  ;;  %v1600_v37 = vld [vmem:[%s2554_s16 + $0x18] sm:$0xff] }
 0x248   : > { %v2214_v58 = vpop.eup %2213 }
 0x249   : > { %v1425_v27 = vsel %vm1424_vm2, %v2212_v23, %v1421_v43  ;;  %v1432_v28 = vmul.f32 %v2214_v58, %v1265_v53  ;;  %vm1437_vm4 = vweird.f32 %v2214_v58  ;;  %v1102_v52 = vpop.f32.mrf.mxu0  ;;  %v1151_v23 = vpop.f32.mrf.mxu1 }
 0x24a   : > { %v1430_v38 = vsel %vm1427_vm3, %v1429_v59, %v1425_v27  ;;  %vm1438_vm6 = vmor %vm1436_vm5, %vm1437_vm4 }
 0x24b   : > { %1553 = vperm.xlu1 %2125, %v1430_v38   ;;  %v1433_v39 = vsub.f32 1.0, %v1432_v28 }
 0x24d   : > { %v1434_v3 = vmul.f32 %v2214_v58, %v1433_v39 }
 0x24f   : > { %v1435_v1 = vadd.f32 %v2214_v58, %v1434_v3 }
 0x251   : > { %v1439_v33 = vsel %vm1438_vm6, %v2214_v58, %v1435_v1  ;;  %v1105_v38 = vpop.f32.mrf.mxu0  ;;  %v1154_v40 = vpop.f32.mrf.mxu1 }
 0x252   : > { %v1444_v50 = vsel %vm1441_vm7, %v1443_v2, %v1439_v33  ;;  %v1150_v33 = vadd.f32 %v1149_v51, %v1100_v49 }
 0x253   : > { %1558 = vperm.xlu0 %2124, %v1444_v50   ;;  %v1514_v5 = vpop.permute.xlu2 %1513 }
 0x254   : > { %v1583_v41 = vmul.f32 %v1514_v5, %v1145_v26  ;;  %v1601_v5 = vld [vmem:[%s2554_s16 + $0x20] sm:$0xff] }
 0x256   : > { %v1615_v10 = vadd.f32 %v1599_v62, %v1583_v41 }
 0x258   : > { %v1647_v31 = vmin.f32 %v1615_v10, 0.0  ;;  %vm1631_vm8 = vcmp.gt.f32.partialorder %v1615_v10, 0.0 }
 0x25a   : > { %v1665_v17 = vmul.f32 1.442695, %v1647_v31 }
 0x25b   : > { %v1504_v19 = vpop.permute.xlu1 %1503 }
 0x25c   : > { %2215 = vpow2.f32 %v1665_v17  ;;  %v1581_v20 = vmul.f32 %v1504_v19, %v1140_v16 }
 0x25e   : > { %v1613_v9 = vadd.f32 %v1597_v13, %v1581_v20 }
 0x260   : > { %v1645_v24 = vmin.f32 %v1613_v9, 0.0  ;;  %vm1629_vm9 = vcmp.gt.f32.partialorder %v1613_v9, 0.0 }
 0x262   : > { %v2216_v46 = vpop.eup %2215  ;;  %v1661_v32 = vmul.f32 1.442695, %v1645_v24 }
 0x263   : > { %v2011_v8 = vadd.f32 -1.0, %v2216_v46  ;;  %v1509_v54 = vpop.permute.xlu0 %1508 }
 0x264   : > { %2217 = vpow2.f32 %v1661_v32  ;;  %v1582_v35 = vmul.f32 %v1509_v54, %v1142_v60  ;;  %v1152_v60 = vadd.f32 %v1151_v23, %v1102_v52  ;;  %v1155_v32 = vadd.f32 %v1154_v40, %v1105_v38 }
 0x265   : > { %v1711_v29 = vsel %vm1631_vm8, %v1615_v10, %v2011_v8  ;;  %v3188_v8 = vpop.f32.mrf.mxu0 }
 0x266   : > { %1727 = vst [vmem:[%s3165_s11 + $0x10] sm:$0xff] %v1711_v29  ;;  %v1614_v30 = vadd.f32 %v1598_v12, %v1582_v35  ;;  %v3196_v29 = vpop.f32.mrf.mxu1 }
 0x268   : > { %v1218_v61 = vpop.f32.mrf.mxu2  ;;  %v1646_v22 = vmin.f32 %v1614_v30, 0.0  ;;  %vm1630_vm10 = vcmp.gt.f32.partialorder %v1614_v30, 0.0 }
 0x269   : > { %v1267_v14 = vpop.f32.mrf.mxu3 }
 0x26a   : > { %v1268_v55 = vadd.f32 %v1267_v14, %v1218_v61  ;;  %v2218_v56 = vpop.eup %2217  ;;  %v1663_v34 = vmul.f32 1.442695, %v1646_v22 }
 0x26b   : > { %v2009_v57 = vadd.f32 -1.0, %v2218_v56  ;;  %v1602_v56 = vld [vmem:[%s2554_s16 + $0x28] sm:$0xff] }
 0x26c   : > { %2219 = vrcp.f32 %v1268_v55  ;;  %v1456_v36 = vand.u32 2147483648, %v1268_v55  ;;  %v1454_v28 = vand.u32 2147483647, %v1268_v55  ;;  %vm1450_vm12 = vweird.f32 %v1268_v55 }
 0x26d   : > { %2221 = vpow2.f32 %v1663_v34  ;;  %v1709_v45 = vsel %vm1629_vm9, %v1613_v9, %v2009_v57 }
 0x26e   : > { %1725 = vst [vmem:[%s3165_s11] sm:$0xff] %v1709_v45  ;;  %v1457_v48 = vor.u32 1.1754944e-38, %v1456_v36  ;;  %vm1455_vm14 = vcmp.eq.f32.partialorder %v1454_v28, 8.507059e+37  ;;  %v1159_v40 = vpop.f32.mrf.mxu1 }
 0x270   : > { %v1220_v15 = vpop.f32.mrf.mxu2 }
 0x271   : > { %v1269_v53 = vpop.f32.mrf.mxu3 }
 0x272   : > { %v2220_v25 = vpop.eup %2219  ;;  %v3169_v11 = vadd.f32 %v1269_v53, %v1220_v15 }
 0x273   : > { %v2222_v21 = vpop.eup %2221  ;;  %v1446_v44 = vmul.f32 %v2220_v25, %v1268_v55  ;;  %v1519_v0 = vpop.permute.xlu0 %1518  ;;  %vm1451_vm11 = vweird.f32 %v2220_v25 }
 0x274   : > { %v2010_v42 = vadd.f32 -1.0, %v2222_v21  ;;  %2223 = vrcp.f32 %v3169_v11  ;;  %v1584_v43 = vmul.f32 %v1519_v0, %v1147_v63  ;;  %vm1452_vm13 = vmor %vm1450_vm12, %vm1451_vm11  ;;  %v1470_v17 = vand.u32 2147483648, %v3169_v11 }
 0x275   : > { %v1447_v58 = vsub.f32 1.0, %v1446_v44  ;;  %v1468_v19 = vand.u32 2147483647, %v3169_v11  ;;  %vm1464_vm0 = vweird.f32 %v3169_v11 }
 0x276   : > { %v1710_v6 = vsel %vm1630_vm10, %v1614_v30, %v2010_v42  ;;  %v3174_v59 = vadd.f32 %v1600_v37, %v1584_v43  ;;  %v1471_v35 = vor.u32 1.1754944e-38, %v1470_v17  ;;  %v1603_v30 = vld [vmem:[%s2554_s16 + $0x30] sm:$0xff] }
 0x277   : > { %1726 = vst [vmem:[%s3165_s11 + $0x8] sm:$0xff] %v1710_v6  ;;  %v1448_v27 = vmul.f32 %v2220_v25, %v1447_v58  ;;  %vm1469_vm2 = vcmp.eq.f32.partialorder %v1468_v19, 8.507059e+37  ;;  %v1606_v19 = vld [vmem:[%s2554_s16 + $0x48] sm:$0xff] }
 0x278   : > { %v1223_v39 = vpop.f32.mrf.mxu2  ;;  %v1648_v3 = vmin.f32 %v3174_v59, 0.0  ;;  %vm1632_vm3 = vcmp.gt.f32.partialorder %v3174_v59, 0.0 }
 0x279   : > { %v1272_v4 = vpop.f32.mrf.mxu3  ;;  %v1449_v1 = vadd.f32 %v2220_v25, %v1448_v27 }
 0x27a   : > { %v2224_v2 = vpop.eup %2223  ;;  %v3177_v7 = vadd.f32 %v1272_v4, %v1223_v39  ;;  %v1667_v50 = vmul.f32 1.442695, %v1648_v3  ;;  %v1110_v39 = vpop.f32.mrf.mxu0 }
 0x27b   : > { %v1453_v26 = vsel %vm1452_vm13, %v2220_v25, %v1449_v1  ;;  %v1460_v62 = vmul.f32 %v2224_v2, %v3169_v11  ;;  %v1524_v41 = vpop.permute.xlu1 %1523  ;;  %vm1465_vm15 = vweird.f32 %v2224_v2 }
 0x27c   : > { %2225 = vrcp.f32 %v3177_v7  ;;  %v1458_v10 = vsel %vm1455_vm14, %v1457_v48, %v1453_v26  ;;  %v1585_v31 = vmul.f32 %v1524_v41, %v1150_v33  ;;  %vm3192_vm1 = vmor %vm1464_vm0, %vm1465_vm15  ;;  %v1484_v25 = vand.u32 2147483648, %v3177_v7 }
 0x27d   : > { %2227 = vpow2.f32 %v1667_v50  ;;  %1563 = vperm.xlu2 %2126, %v1458_v10   ;;  %v1461_v16 = vsub.f32 1.0, %v1460_v62  ;;  %v1482_v63 = vand.u32 2147483647, %v3177_v7  ;;  %vm1478_vm5 = vweird.f32 %v3177_v7 }
 0x27e   : > { %v3183_v18 = vadd.f32 %v1601_v5, %v1585_v31  ;;  %v1485_v58 = vor.u32 1.1754944e-38, %v1484_v25 }
 0x27f   : > { %v1462_v13 = vmul.f32 %v2224_v2, %v1461_v16  ;;  %vm1483_vm7 = vcmp.eq.f32.partialorder %v1482_v63, 8.507059e+37  ;;  %v1607_v63 = vld [vmem:[%s2554_s16 + $0x50] sm:$0xff] }
 0x280   : > { %v1225_v47 = vpop.f32.mrf.mxu2  ;;  %v1649_v20 = vmin.f32 %v3183_v18, 0.0  ;;  %vm1633_vm8 = vcmp.gt.f32.partialorder %v3183_v18, 0.0 }
 0x281   : > { %v1274_v9 = vpop.f32.mrf.mxu3  ;;  %v1463_v24 = vadd.f32 %v2224_v2, %v1462_v13 }
 0x282   : > { %v2226_v46 = vpop.eup %2225  ;;  %v3190_v12 = vadd.f32 %v1274_v9, %v1225_v47  ;;  %v1669_v51 = vmul.f32 1.442695, %v1649_v20  ;;  %v1112_v17 = vpop.f32.mrf.mxu0 }
 0x283   : > { %v2228_v49 = vpop.eup %2227  ;;  %v1467_v22 = vsel %vm3192_vm1, %v2224_v2, %v1463_v24  ;;  %v1474_v14 = vmul.f32 %v2226_v46, %v3177_v7  ;;  %v1529_v34 = vpop.permute.xlu0 %1528  ;;  %vm1479_vm4 = vweird.f32 %v2226_v46 }
 0x284   : > { %v2012_v55 = vadd.f32 -1.0, %v2228_v49  ;;  %2229 = vrcp.f32 %v3190_v12  ;;  %v1472_v45 = vsel %vm1469_vm2, %v1471_v35, %v1467_v22  ;;  %v1586_v52 = vmul.f32 %v1529_v34, %v1152_v60  ;;  %vm1480_vm6 = vmor %vm1478_vm5, %vm1479_vm4 }
 0x285   : > { %v1534_v61 = vpop.permute.xlu2 %1533  ;;  %2231 = vpow2.f32 %v1669_v51  ;;  %1568 = vperm.xlu1 %2125, %v1472_v45   ;;  %v1475_v15 = vsub.f32 1.0, %v1474_v14  ;;  %v1498_v1 = vand.u32 2147483648, %v3190_v12  ;;  %v1496_v33 = vand.u32 2147483647, %v3190_v12  ;;  %v1605_v14 = vld [vmem:[%s2554_s16 + $0x40] sm:$0xff] }
 0x286   : > { %v1587_v57 = vmul.f32 %v1534_v61, %v1155_v32  ;;  %v1712_v23 = vsel %vm1632_vm3, %v3174_v59, %v2012_v55  ;;  %v1618_v11 = vadd.f32 %v1602_v56, %v1586_v52  ;;  %vm1492_vm10 = vweird.f32 %v3190_v12  ;;  %v1604_v32 = vld [vmem:[%s2554_s16 + $0x38] sm:$0xff] }
 0x287   : > { %1728 = vst [vmem:[%s3165_s11 + $0x18] sm:$0xff] %v1712_v23  ;;  %v1476_v21 = vmul.f32 %v2226_v46, %v1475_v15  ;;  %v1499_v50 = vor.u32 1.1754944e-38, %v1498_v1  ;;  %vm1497_vm12 = vcmp.eq.f32.partialorder %v1496_v33, 8.507059e+37 }
 0x288   : > { %v1619_v53 = vadd.f32 %v1603_v30, %v1587_v57  ;;  %v1650_v42 = vmin.f32 %v1618_v11, 0.0  ;;  %vm1634_vm14 = vcmp.gt.f32.partialorder %v1618_v11, 0.0  ;;  %v1160_v30 = vadd.f32 %v1159_v40, %v1110_v39 }
 0x289   : > { %v1477_v37 = vadd.f32 %v2226_v46, %v1476_v21 }
 0x28a   : > { %v1651_v44 = vmin.f32 %v1619_v53, 0.0  ;;  %v2230_v0 = vpop.eup %2229  ;;  %v1671_v36 = vmul.f32 1.442695, %v1650_v42  ;;  %vm1635_vm13 = vcmp.gt.f32.partialorder %v1619_v53, 0.0  ;;  %v1115_v15 = vpop.f32.mrf.mxu0 }
 0x28b   : > { %v2232_v6 = vpop.eup %2231  ;;  %v1481_v59 = vsel %vm1480_vm6, %v2226_v46, %v1477_v37  ;;  %v1488_v27 = vmul.f32 %v2230_v0, %v3190_v12  ;;  %vm1493_vm9 = vweird.f32 %v2230_v0  ;;  %v1157_v46 = vadd.f32 %v3196_v29, %v3188_v8 }
 0x28c   : > { %v1673_v43 = vmul.f32 1.442695, %v1651_v44  ;;  %v2013_v28 = vadd.f32 -1.0, %v2232_v6  ;;  %v1486_v38 = vsel %vm1483_vm7, %v1485_v58, %v1481_v59  ;;  %vm1494_vm11 = vmor %vm1492_vm10, %vm1493_vm9 }
 0x28d   : > { %1573 = vperm.xlu0 %2124, %v1486_v38   ;;  %v1489_v3 = vsub.f32 1.0, %v1488_v27  ;;  %v1608_v27 = vld [vmem:[%s2554_s16 + $0x58] sm:$0xff] }
 0x28e   : > { %2233 = vpow2.f32 %v1673_v43  ;;  %v1713_v4 = vsel %vm1633_vm8, %v3183_v18, %v2013_v28  ;;  %v1161_v18 = vpop.f32.mrf.mxu1 }
 0x28f   : > { %2235 = vpow2.f32 %v1671_v36  ;;  %1729 = vst [vmem:[%s3165_s11 + $0x20] sm:$0xff] %v1713_v4  ;;  %v1490_v2 = vmul.f32 %v2230_v0, %v1489_v3  ;;  %v1162_v13 = vadd.f32 %v1161_v18, %v1112_v17 }
 0x291   : > { %v1491_v7 = vadd.f32 %v2230_v0, %v1490_v2 }
 0x292   : > { %v1117_v43 = vpop.f32.mrf.mxu0 }
 0x293   : > { %v1495_v5 = vsel %vm1494_vm11, %v2230_v0, %v1491_v7 }
 0x294   : > { %v2234_v48 = vpop.eup %2233  ;;  %v1500_v10 = vsel %vm1497_vm12, %v1499_v50, %v1495_v5 }
 0x295   : > { %v2236_v26 = vpop.eup %2235  ;;  %v2015_v62 = vadd.f32 -1.0, %v2234_v48  ;;  %1578 = vperm.xlu2 %2126, %v1500_v10   ;;  %v1609_v10 = vld [vmem:[%s2554_s16 + $0x60] sm:$0xff] }
 0x296   : > { %v2014_v41 = vadd.f32 -1.0, %v2236_v26  ;;  %v1164_v23 = vpop.f32.mrf.mxu1 }
 0x297   : > { %v1715_v31 = vsel %vm1635_vm13, %v1619_v53, %v2015_v62 }
 0x298   : > { %v1714_v16 = vsel %vm1634_vm14, %v1618_v11, %v2014_v41  ;;  %1731 = vst [vmem:[%s3165_s11 + $0x30] sm:$0xff] %v1715_v31  ;;  %v1165_v11 = vadd.f32 %v1164_v23, %v1115_v15 }
 0x299   : > { %1730 = vst [vmem:[%s3165_s11 + $0x28] sm:$0xff] %v1714_v16 }
 0x29a   : > { %v1120_v2 = vpop.f32.mrf.mxu0 }
 0x29d   : > { %v1549_v47 = vpop.permute.xlu2 %1548 }
 0x29e   : > { %v1590_v20 = vmul.f32 %v1549_v47, %v1162_v13  ;;  %v1166_v58 = vpop.f32.mrf.mxu1 }
 0x29f   : > { %v1167_v36 = vadd.f32 %v1166_v58, %v1117_v43 }
 0x2a0   : > { %v1622_v9 = vadd.f32 %v1606_v19, %v1590_v20 }
 0x2a2   : > { %v1654_v24 = vmin.f32 %v1622_v9, 0.0  ;;  %vm1638_vm15 = vcmp.gt.f32.partialorder %v1622_v9, 0.0  ;;  %v1122_v5 = vpop.f32.mrf.mxu0 }
 0x2a4   : > { %v1679_v60 = vmul.f32 1.442695, %v1654_v24 }
 0x2a5   : > { %v1539_v12 = vpop.permute.xlu1 %1538 }
 0x2a6   : > { %2237 = vpow2.f32 %v1679_v60  ;;  %v1588_v54 = vmul.f32 %v1539_v12, %v1157_v46  ;;  %v1169_v33 = vpop.f32.mrf.mxu1  ;;  %v1612_v12 = vld [vmem:[%s2554_s16 + $0x78] sm:$0xff] }
 0x2a7   : > { %v1170_v62 = vadd.f32 %v1169_v33, %v1120_v2 }
 0x2a8   : > { %v1620_v35 = vadd.f32 %v1604_v32, %v1588_v54 }
 0x2aa   : > { %v1652_v49 = vmin.f32 %v1620_v35, 0.0  ;;  %vm1636_vm0 = vcmp.gt.f32.partialorder %v1620_v35, 0.0  ;;  %v1125_v19 = vpop.f32.mrf.mxu0 }
 0x2ac   : > { %v2238_v51 = vpop.eup %2237  ;;  %v1675_v61 = vmul.f32 1.442695, %v1652_v49 }
 0x2ad   : > { %v2018_v22 = vadd.f32 -1.0, %v2238_v51  ;;  %v1544_v55 = vpop.permute.xlu0 %1543 }
 0x2ae   : > { %2239 = vpow2.f32 %v1675_v61  ;;  %v1589_v56 = vmul.f32 %v1544_v55, %v1160_v30  ;;  %v1171_v41 = vpop.f32.mrf.mxu1 }
 0x2af   : > { %v1718_v34 = vsel %vm1638_vm15, %v1622_v9, %v2018_v22  ;;  %v1172_v30 = vadd.f32 %v1171_v41, %v1122_v5  ;;  %v1610_v22 = vld [vmem:[%s2554_s16 + $0x68] sm:$0xff] }
 0x2b0   : > { %1734 = vst [vmem:[%s3165_s11 + $0x48] sm:$0xff] %v1718_v34  ;;  %v1621_v8 = vadd.f32 %v1605_v14, %v1589_v56 }
 0x2b2   : > { %v1653_v29 = vmin.f32 %v1621_v8, 0.0  ;;  %vm1637_vm1 = vcmp.gt.f32.partialorder %v1621_v8, 0.0  ;;  %v1127_v46 = vpop.f32.mrf.mxu0 }
 0x2b4   : > { %v2240_v57 = vpop.eup %2239  ;;  %v1677_v45 = vmul.f32 1.442695, %v1653_v29 }
 0x2b5   : > { %v2016_v52 = vadd.f32 -1.0, %v2240_v57 }
 0x2b6   : > { %2241 = vpow2.f32 %v1677_v45  ;;  %v1174_v47 = vpop.f32.mrf.mxu1 }
 0x2b7   : > { %v1716_v53 = vsel %vm1636_vm0, %v1620_v35, %v2016_v52  ;;  %v1175_v29 = vadd.f32 %v1174_v47, %v1125_v19  ;;  %v1611_v52 = vld [vmem:[%s2554_s16 + $0x70] sm:$0xff] }
 0x2b8   : > { %1732 = vst [vmem:[%s3165_s11 + $0x38] sm:$0xff] %v1716_v53 }
 0x2bc   : > { %v2242_v25 = vpop.eup %2241 }
 0x2bd   : > { %v2017_v21 = vadd.f32 -1.0, %v2242_v25  ;;  %v1554_v44 = vpop.permute.xlu1 %1553 }
 0x2be   : > { %v1591_v42 = vmul.f32 %v1554_v44, %v1165_v11  ;;  %v1176_v60 = vpop.f32.mrf.mxu1 }
 0x2bf   : > { %v1717_v37 = vsel %vm1637_vm1, %v1621_v8, %v2017_v21  ;;  %v1177_v32 = vadd.f32 %v1176_v60, %v1127_v46 }
 0x2c0   : > { %1733 = vst [vmem:[%s3165_s11 + $0x40] sm:$0xff] %v1717_v37  ;;  %v1623_v0 = vadd.f32 %v1607_v63, %v1591_v42 }
 0x2c2   : > { %v1655_v6 = vmin.f32 %v1623_v0, 0.0  ;;  %vm1639_vm2 = vcmp.gt.f32.partialorder %v1623_v0, 0.0 }
 0x2c4   : > { %v1681_v59 = vmul.f32 1.442695, %v1655_v6 }
 0x2c5   : > { %v1559_v28 = vpop.permute.xlu0 %1558 }
 0x2c6   : > { %2243 = vpow2.f32 %v1681_v59  ;;  %v1592_v38 = vmul.f32 %v1559_v28, %v1167_v36 }
 0x2c8   : > { %v1624_v39 = vadd.f32 %v1608_v27, %v1592_v38 }
 0x2ca   : > { %v1656_v40 = vmin.f32 %v1624_v39, 0.0  ;;  %vm1640_vm3 = vcmp.gt.f32.partialorder %v1624_v39, 0.0 }
 0x2cc   : > { %v2244_v3 = vpop.eup %2243  ;;  %v1683_v4 = vmul.f32 1.442695, %v1656_v40 }
 0x2cd   : > { %v2019_v1 = vadd.f32 -1.0, %v2244_v3 }
 0x2ce   : > { %2245 = vpow2.f32 %v1683_v4 }
 0x2cf   : > { %v1719_v7 = vsel %vm1639_vm2, %v1623_v0, %v2019_v1 }
 0x2d0   : > { %1735 = vst [vmem:[%s3165_s11 + $0x50] sm:$0xff] %v1719_v7 }
 0x2d4   : > { %v2246_v48 = vpop.eup %2245 }
 0x2d5   : > { %v2020_v50 = vadd.f32 -1.0, %v2246_v48 }
 0x2d7   : > { %v1720_v26 = vsel %vm1640_vm3, %v1624_v39, %v2020_v50  ;;  %v1564_v31 = vpop.permute.xlu2 %1563 }
 0x2d8   : > { %1736 = vst [vmem:[%s3165_s11 + $0x58] sm:$0xff] %v1720_v26  ;;  %v1593_v16 = vmul.f32 %v1564_v31, %v1170_v62 }
 0x2da   : > { %v1625_v17 = vadd.f32 %v1609_v10, %v1593_v16 }
 0x2dc   : > { %v1657_v18 = vmin.f32 %v1625_v17, 0.0  ;;  %vm1641_vm4 = vcmp.gt.f32.partialorder %v1625_v17, 0.0 }
 0x2de   : > { %v1685_v13 = vmul.f32 1.442695, %v1657_v18 }
 0x2e0   : > { %2247 = vpow2.f32 %v1685_v13 }
 0x2e6   : > { %v2248_v20 = vpop.eup %2247 }
 0x2e7   : > { %v2021_v9 = vadd.f32 -1.0, %v2248_v20 }
 0x2e9   : > { %v1721_v24 = vsel %vm1641_vm4, %v1625_v17, %v2021_v9 }
 0x2ea   : > { %1737 = vst [vmem:[%s3165_s11 + $0x60] sm:$0xff] %v1721_v24 }
 0x2ef   : > { %v1579_v54 = vpop.permute.xlu2 %1578 }
 0x2f0   : > { %v1596_v35 = vmul.f32 %v1579_v54, %v1177_v32 }
 0x2f2   : > { %v1628_v49 = vadd.f32 %v1612_v12, %v1596_v35 }
 0x2f4   : > { %v1660_v51 = vmin.f32 %v1628_v49, 0.0  ;;  %vm1644_vm5 = vcmp.gt.f32.partialorder %v1628_v49, 0.0 }
 0x2f6   : > { %v1691_v61 = vmul.f32 1.442695, %v1660_v51 }
 0x2f7   : > { %v1569_v14 = vpop.permute.xlu1 %1568 }
 0x2f8   : > { %2249 = vpow2.f32 %v1691_v61  ;;  %v1594_v55 = vmul.f32 %v1569_v14, %v1172_v30 }
 0x2fa   : > { %v1626_v56 = vadd.f32 %v1610_v22, %v1594_v55 }
 0x2fc   : > { %v1658_v34 = vmin.f32 %v1626_v56, 0.0  ;;  %vm1642_vm6 = vcmp.gt.f32.partialorder %v1626_v56, 0.0 }
 0x2fe   : > { %v2250_v8 = vpop.eup %2249  ;;  %v1687_v57 = vmul.f32 1.442695, %v1658_v34 }
 0x2ff   : > { %v2024_v45 = vadd.f32 -1.0, %v2250_v8  ;;  %v1574_v15 = vpop.permute.xlu0 %1573 }
 0x300   : > { %2251 = vpow2.f32 %v1687_v57  ;;  %v1595_v23 = vmul.f32 %v1574_v15, %v1175_v29 }
 0x301   : > { %v1724_v53 = vsel %vm1644_vm5, %v1628_v49, %v2024_v45 }
 0x302   : > { %1740 = vst [vmem:[%s3165_s11 + $0x78] sm:$0xff] %v1724_v53  ;;  %v1627_v25 = vadd.f32 %v1611_v52, %v1595_v23 }
 0x304   : > { %v1659_v11 = vmin.f32 %v1627_v25, 0.0  ;;  %vm1643_vm7 = vcmp.gt.f32.partialorder %v1627_v25, 0.0 }
 0x306   : > { %v2252_v21 = vpop.eup %2251  ;;  %v1689_v63 = vmul.f32 1.442695, %v1659_v11 }
 0x307   : > { %v2022_v44 = vadd.f32 -1.0, %v2252_v21 }
 0x308   : > { %2253 = vpow2.f32 %v1689_v63 }
 0x309   : > { %v1722_v42 = vsel %vm1642_vm6, %v1626_v56, %v2022_v44 }
 0x30a   : > { %1738 = vst [vmem:[%s3165_s11 + $0x68] sm:$0xff] %v1722_v42 }
 0x30e   : > { %v2254_v37 = vpop.eup %2253 }
 0x30f   : > { %v2023_v0 = vadd.f32 -1.0, %v2254_v37 }
 0x311   : > { %v1723_v43 = vsel %vm1643_vm7, %v1627_v25, %v2023_v0 }
 0x312   : > { %1739 = vst [vmem:[%s3165_s11 + $0x70] sm:$0xff] %v1723_v43 }
 0x313   : > { %2342 = shalt.err (!%p2339_p1)
}
 0x314   : > { %s2392_s26 = smov 128   ;;  %s2393_s13 = smov 8  }
 0x315   : > { %2070 = dma.vmem_to_hbm [thread:$0]  (%p2474_p11), %s1755_s7, 2048, %s1757_s23, %s1742_s22, %s2392_s26, %s2392_s26, %s2393_s13  }
 0x316 PF: > { %s1771_s15 = sand.u32 1, %s2373_s18   ;;  %p3324_p4 = scmp.ge.s32.totalorder %s2385_s21, 2 }
 0x317   : > { %s1772_s29 = scalar_lea.sflag [#allocation4], %s1771_s15 }
 0x318   : > { %p2080_p7 = pnand %p3324_p4, %p2478_p12 }
 0x31a   : > { %p2081_p5 = pneg %p2080_p7 }
 0x31c   : > { %2368 = dma.done.wait (%p2081_p5), %s1772_s29, 2048  }
 0x31d   : > { %2370 = vsyncadd (%p2081_p5), %s1772_s29, 4294965248  ;;  %s3325_s17 = sld [smem:[#allocation11_spill]]  ;;  %p21_p8 = scmp.ge.s32.totalorder %s2449_s24, 4  }
 0x31e   : > { %s3326_s20 = sld [smem:[#allocation12_spill]]  ;;  %s3327_s18 = smov %s2377_s19 }
 0x31f   : > { %s3329_s21 = smov %s2449_s24  ;;  %23 = sbr.rel (!%p21_p8) target bundleno = 9 (0x9), region = 101 }
 0x323   : > { %s3328_s19 = smov %s3325_s17 }
 0x324   :  { %1778 = vsyncpa [#allocation3], 1 }
 0x325   :  { %1780 = vsyncpa [#allocation3 + $0x1], 1 }
 0x326   :  { %1781 = vsyncpa [#allocation6], 1 }
 0x327   :  { %1783 = vsyncpa [#allocation6 + $0x1], 1 }
 0x328   :  { %1784 = vsyncpa [#allocation4], 1 }
 0x329   :  { %1786 = vsyncpa [#allocation4 + $0x1], 1 }

</bundles_post_ra>
